<compile_context>
chip_gen: v6e
topology: v6e:2x2x1
jax: 0.10.0
libtpu: 0.0.40
codegen_flags: <defaults>
</compile_context>

<pallas_src>
import numpy as np

import jax
import jax.numpy as jnp
from jax.experimental import pallas as pl

_LANE_PAD = 128   # final FC output padded to one full lane width
_KH = 3           # 3x3 kernel, stride 2, padding 1 (fixed by the module)


# ---------------------------------------------------------------------------
# Pallas kernel: entire encoder in one invocation, everything VMEM-resident.
# ---------------------------------------------------------------------------
def _encoder_kernel(a0_ref,
                    s1_ref, t1_ref, b1_ref,
                    s2_ref, t2_ref, b2_ref,
                    s3_ref, t3_ref, b3_ref,
                    s4_ref, t4_ref, b4_ref,
                    sh_ref, wf_ref, bf_ref,
                    out_ref):
    def conv(act, s_ref, t_ref, b_ref):
        # act: [N*Hin, Win*Cin] bf16  ->  [N*Hout, Wout*Cout] bf16
        m = s_ref.shape[1]          # N*Hout
        n_out = t_ref.shape[2]      # Wout*Cout (multiple of 128 -> lane dense)
        acc = jnp.zeros((m, n_out), jnp.float32)
        for kh in range(_KH):       # statically unrolled: 3 tap-row matmul pairs
            rows = jnp.dot(s_ref[kh], act, preferred_element_type=jnp.float32)
            acc += jnp.dot(rows.astype(jnp.bfloat16), t_ref[kh],
                           preferred_element_type=jnp.float32)
        acc = jnp.maximum(acc + b_ref[...], 0.0)      # bias + ReLU in f32
        return acc.astype(jnp.bfloat16)

    act = a0_ref[...]                                  # [N*32, 32*Cin]
    act = conv(act, s1_ref, t1_ref, b1_ref)            # [N*16, 16*32] = [_, 512]
    act = conv(act, s2_ref, t2_ref, b2_ref)            # [N*8,   8*32] = [_, 256]
    act = conv(act, s3_ref, t3_ref, b3_ref)            # [N*4,   4*64] = [_, 256]
    act = conv(act, s4_ref, t4_ref, b4_ref)            # [N*2,   2*64] = [_, 128]

    # FC: torch's NCHW .view(-1, 256) is pre-folded into wf (one slab per h row).
    n_b = sh_ref.shape[1]
    acc = jnp.zeros((n_b, wf_ref.shape[2]), jnp.float32)
    for h in range(2):
        rows = jnp.dot(sh_ref[h], act, preferred_element_type=jnp.float32)
        acc += jnp.dot(rows.astype(jnp.bfloat16), wf_ref[h],
                       preferred_element_type=jnp.float32)
    out_ref[...] = acc + bf_ref[...]                   # [N, 128] f32, full-width store


def _full_block(shape):
    return pl.BlockSpec(shape, lambda: (0,) * len(shape))


# ---------------------------------------------------------------------------
# Host-side constant folding (done once per parameter set / batch size).
# ---------------------------------------------------------------------------
def _toeplitz_weights(w, win, wo):
    """w: [Cout, Cin, 3, 3] -> [3, Win*Cin, Wo*Cout] bf16.
    T_kh[(wi*Cin+ci), (xo*Cout+co)] = w[co, ci, kh, wi - 2*xo + 1] (0 if tap OOB):
    horizontal stride-2 gather + W zero-padding folded into the weight matrix."""
    cout, cin = w.shape[0], w.shape[1]
    sel = np.zeros((win, wo, _KH), np.float32)
    for xo in range(wo):
        for kw in range(_KH):
            wi = 2 * xo + kw - 1
            if 0 <= wi < win:
                sel[wi, xo, kw] = 1.0
    sel = jnp.asarray(sel)
    mats = []
    for kh in range(_KH):
        t = jnp.einsum("xyk,ock->xcyo", sel, w[:, :, kh, :])   # (wi, ci, xo, co)
        mats.append(t.reshape(win * cin, wo * cout))
    return jnp.stack(mats).astype(jnp.bfloat16)


def _bias_row(b, wo):
    # lane index = xo*Cout + co  ->  bias tiled Wo times.
    return jnp.tile(b, wo).reshape(1, -1).astype(jnp.float32)


def _row_select(n, hin, ho):
    """0/1 matrices implementing the vertical stride-2 gather + H zero-padding:
    S_kh[(b*Ho+yo), (b*Hin+hi)] = 1  iff  hi == 2*yo + kh - 1 is in range."""
    s = np.zeros((_KH, n * ho, n * hin), np.float32)
    for kh in range(_KH):
        for b in range(n):
            for yo in range(ho):
                hi = 2 * yo + kh - 1
                if 0 <= hi < hin:
                    s[kh, b * ho + yo, b * hin + hi] = 1.0
    return jnp.asarray(s, dtype=jnp.bfloat16)


def _fc_row_select(n):
    s = np.zeros((2, n, 2 * n), np.float32)
    for h in range(2):
        for b in range(n):
            s[h, b, 2 * b + h] = 1.0
    return jnp.asarray(s, dtype=jnp.bfloat16)


def _fc_weights(fc_w, fc_b):
    """fc_w: [n_latent, 256] over the NCHW flatten of a [64, 2, 2] activation.
    Re-index to our [row=(n,h), lane=(w*64+c)] layout; pad n_latent -> 128 lanes."""
    n_latent = fc_w.shape[0]
    wr = fc_w.reshape(n_latent, 64, 2, 2)                       # (j, c, h, w)
    slabs = []
    for h in range(2):
        s = jnp.transpose(wr[:, :, h, :], (2, 1, 0)).reshape(2 * 64, n_latent)
        slabs.append(jnp.pad(s, ((0, 0), (0, _LANE_PAD - n_latent))))
    wf = jnp.stack(slabs).astype(jnp.bfloat16)                  # [2, 128, 128]
    bf = jnp.pad(fc_b, (0, _LANE_PAD - n_latent)).reshape(1, _LANE_PAD)
    return wf, bf.astype(jnp.float32)


def make_encoder(params, *, img_channels=1, n_latent=4):
    """Returns a jitted forward(x) for x of shape [N, img_channels, 32, 32]."""
    assert n_latent <= _LANE_PAD
    # (Cin, Cout, Hin) for the four stride-2 convs; spatial dims fixed at 32x32.
    layer_defs = ((img_channels, 32, 32), (32, 32, 16), (32, 64, 8), (64, 64, 4))

    conv_consts = []
    for i, (cin, cout, hin) in enumerate(layer_defs, start=1):
        conv_consts.append((_toeplitz_weights(params[f"conv{i}_w"], hin, hin // 2),
                            _bias_row(params[f"conv{i}_b"], hin // 2)))
    wf, bf = _fc_weights(params["fc_w"], params["fc_b"])

    @jax.jit
    def forward(x):
        n, c, h, w = x.shape
        assert c == img_channels and h == 32 and w == 32
        # NCHW -> 2-D [N*H, W*C] activation matrix (a pure reshape when C == 1).
        a0 = jnp.transpose(x, (0, 2, 3, 1)).reshape(n * h, w * c).astype(jnp.bfloat16)

        operands = [a0]
        for (cin, cout, hin), (tmat, brow) in zip(layer_defs, conv_consts):
            operands += [_row_select(n, hin, hin // 2), tmat, brow]
        operands += [_fc_row_select(n), wf, bf]

        out = pl.pallas_call(
            _encoder_kernel,
            out_shape=jax.ShapeDtypeStruct((n, _LANE_PAD), jnp.float32),
            in_specs=[_full_block(o.shape) for o in operands],
            out_specs=_full_block((n, _LANE_PAD)),
        )(*operands)
        return out[:, :n_latent]

    return forward


# ---------------------------------------------------------------------------
# Parameters (deterministic Kaiming-normal-style init, zero biases)
# ---------------------------------------------------------------------------
def init_params(key, n_latent=4, img_channels=1):
    ks = jax.random.split(key, 5)

    def conv_w(k, cout, cin):
        return jax.random.normal(k, (cout, cin, 3, 3), jnp.float32) * jnp.sqrt(2.0 / (cin * 9))

    return {
        "conv1_w": conv_w(ks[0], 32, img_channels), "conv1_b": jnp.zeros((32,), jnp.float32),
        "conv2_w": conv_w(ks[1], 32, 32),           "conv2_b": jnp.zeros((32,), jnp.float32),
        "conv3_w": conv_w(ks[2], 64, 32),           "conv3_b": jnp.zeros((64,), jnp.float32),
        "conv4_w": conv_w(ks[3], 64, 64),           "conv4_b": jnp.zeros((64,), jnp.float32),
        "fc_w": jax.random.normal(ks[4], (n_latent, 256), jnp.float32) * jnp.sqrt(2.0 / 256),
        "fc_b": jnp.zeros((n_latent,), jnp.float32),
    }


# ---------------------------------------------------------------------------
# Pure-JAX reference (mirrors encoderBVAE_like.forward) for a sanity check.
# ---------------------------------------------------------------------------
@jax.jit
def _reference_forward(params, x):
    def conv(x, w, b):
        y = jax.lax.conv_general_dilated(
            x, w, window_strides=(2, 2), padding=((1, 1), (1, 1)),
            dimension_numbers=("NCHW", "OIHW", "NCHW"))
        return jax.nn.relu(y + b.reshape(1, -1, 1, 1))

    x = conv(x, params["conv1_w"], params["conv1_b"])
    x = conv(x, params["conv2_w"], params["conv2_b"])
    x = conv(x, params["conv3_w"], params["conv3_b"])
    x = conv(x, params["conv4_w"], params["conv4_b"])
    flat = x.reshape(x.shape[0], -1)                 # NCHW flatten == torch .view(-1, 256)
    return flat @ params["fc_w"].T + params["fc_b"]


if __name__ == "__main__":
    key = jax.random.PRNGKey(0)
    k_param, k_in = jax.random.split(key)
    params = init_params(k_param, n_latent=4, img_channels=1)
    x = jax.random.normal(k_in, (2, 1, 32, 32), jnp.float32)   # spatial fixed at 32x32

    forward = make_encoder(params, img_channels=1, n_latent=4)
    out = jax.block_until_ready(forward(x))
    assert out.shape == (2, 4)

    ref = jax.block_until_ready(_reference_forward(params, x))
    np.testing.assert_allclose(np.asarray(out), np.asarray(ref), rtol=0.15, atol=0.15)

    print("KERNEL_OK")
</pallas_src>

<mosaic_0001>
module attributes {stable_mosaic.version = 11 : i64} {
  func.func @_encoder_kernel(%arg0: memref<64x32xbf16, #tpu.memory_space<vmem>>, %arg1: memref<3x32x64xbf16, #tpu.memory_space<vmem>>, %arg2: memref<3x32x512xbf16, #tpu.memory_space<vmem>>, %arg3: memref<1x512xf32, #tpu.memory_space<vmem>>, %arg4: memref<3x16x32xbf16, #tpu.memory_space<vmem>>, %arg5: memref<3x512x256xbf16, #tpu.memory_space<vmem>>, %arg6: memref<1x256xf32, #tpu.memory_space<vmem>>, %arg7: memref<3x8x16xbf16, #tpu.memory_space<vmem>>, %arg8: memref<3x256x256xbf16, #tpu.memory_space<vmem>>, %arg9: memref<1x256xf32, #tpu.memory_space<vmem>>, %arg10: memref<3x4x8xbf16, #tpu.memory_space<vmem>>, %arg11: memref<3x256x128xbf16, #tpu.memory_space<vmem>>, %arg12: memref<1x128xf32, #tpu.memory_space<vmem>>, %arg13: memref<2x2x4xbf16, #tpu.memory_space<vmem>>, %arg14: memref<2x128x128xbf16, #tpu.memory_space<vmem>>, %arg15: memref<1x128xf32, #tpu.memory_space<vmem>>, %arg16: memref<2x128xf32, #tpu.memory_space<vmem>>) attributes {dimension_semantics = [], scalar_prefetch = 0 : i64, scratch_operands = 0 : i64, tpu.core_type = #tpu.core_type<tc>} {
    %c0 = arith.constant 0 : index
    %c0_0 = arith.constant 0 : index
    %0 = vector.load %arg0[%c0, %c0_0] : memref<64x32xbf16, #tpu.memory_space<vmem>>, vector<64x32xbf16>
    %cst = arith.constant 0.000000e+00 : f32
    %1 = vector.broadcast %cst : f32 to vector<32x512xf32>
    %c0_1 = arith.constant 0 : index
    %c0_2 = arith.constant 0 : index
    %c0_3 = arith.constant 0 : index
    %2 = vector.load %arg1[%c0_1, %c0_2, %c0_3] : memref<3x32x64xbf16, #tpu.memory_space<vmem>>, vector<1x32x64xbf16>
    %3 = vector.shape_cast %2 : vector<1x32x64xbf16> to vector<32x64xbf16>
    %cst_4 = arith.constant dense<0.000000e+00> : vector<32x32xf32>
    %4 = tpu.matmul %3, %0, %cst_4 {dimension_numbers = #tpu.dot_dimension_numbers<[1], [0], [0], [1], [0, 0, 1, 1], [], []>} : vector<32x64xbf16>, vector<64x32xbf16>, vector<32x32xf32> -> vector<32x32xf32>
    %5 = arith.truncf %4 : vector<32x32xf32> to vector<32x32xbf16>
    %c0_5 = arith.constant 0 : index
    %c0_6 = arith.constant 0 : index
    %c0_7 = arith.constant 0 : index
    %6 = vector.load %arg2[%c0_5, %c0_6, %c0_7] : memref<3x32x512xbf16, #tpu.memory_space<vmem>>, vector<1x32x512xbf16>
    %7 = vector.shape_cast %6 : vector<1x32x512xbf16> to vector<32x512xbf16>
    %cst_8 = arith.constant dense<0.000000e+00> : vector<32x512xf32>
    %8 = tpu.matmul %5, %7, %cst_8 {dimension_numbers = #tpu.dot_dimension_numbers<[1], [0], [0], [1], [0, 0, 1, 1], [], []>} : vector<32x32xbf16>, vector<32x512xbf16>, vector<32x512xf32> -> vector<32x512xf32>
    %9 = arith.addf %1, %8 : vector<32x512xf32>
    %c1 = arith.constant 1 : index
    %c0_9 = arith.constant 0 : index
    %c0_10 = arith.constant 0 : index
    %10 = vector.load %arg1[%c1, %c0_9, %c0_10] : memref<3x32x64xbf16, #tpu.memory_space<vmem>>, vector<1x32x64xbf16>
    %11 = vector.shape_cast %10 : vector<1x32x64xbf16> to vector<32x64xbf16>
    %cst_11 = arith.constant dense<0.000000e+00> : vector<32x32xf32>
    %12 = tpu.matmul %11, %0, %cst_11 {dimension_numbers = #tpu.dot_dimension_numbers<[1], [0], [0], [1], [0, 0, 1, 1], [], []>} : vector<32x64xbf16>, vector<64x32xbf16>, vector<32x32xf32> -> vector<32x32xf32>
    %13 = arith.truncf %12 : vector<32x32xf32> to vector<32x32xbf16>
    %c1_12 = arith.constant 1 : index
    %c0_13 = arith.constant 0 : index
    %c0_14 = arith.constant 0 : index
    %14 = vector.load %arg2[%c1_12, %c0_13, %c0_14] : memref<3x32x512xbf16, #tpu.memory_space<vmem>>, vector<1x32x512xbf16>
    %15 = vector.shape_cast %14 : vector<1x32x512xbf16> to vector<32x512xbf16>
    %cst_15 = arith.constant dense<0.000000e+00> : vector<32x512xf32>
    %16 = tpu.matmul %13, %15, %cst_15 {dimension_numbers = #tpu.dot_dimension_numbers<[1], [0], [0], [1], [0, 0, 1, 1], [], []>} : vector<32x32xbf16>, vector<32x512xbf16>, vector<32x512xf32> -> vector<32x512xf32>
    %17 = arith.addf %9, %16 : vector<32x512xf32>
    %c2 = arith.constant 2 : index
    %c0_16 = arith.constant 0 : index
    %c0_17 = arith.constant 0 : index
    %18 = vector.load %arg1[%c2, %c0_16, %c0_17] : memref<3x32x64xbf16, #tpu.memory_space<vmem>>, vector<1x32x64xbf16>
    %19 = vector.shape_cast %18 : vector<1x32x64xbf16> to vector<32x64xbf16>
    %cst_18 = arith.constant dense<0.000000e+00> : vector<32x32xf32>
    %20 = tpu.matmul %19, %0, %cst_18 {dimension_numbers = #tpu.dot_dimension_numbers<[1], [0], [0], [1], [0, 0, 1, 1], [], []>} : vector<32x64xbf16>, vector<64x32xbf16>, vector<32x32xf32> -> vector<32x32xf32>
    %21 = arith.truncf %20 : vector<32x32xf32> to vector<32x32xbf16>
    %c2_19 = arith.constant 2 : index
    %c0_20 = arith.constant 0 : index
    %c0_21 = arith.constant 0 : index
    %22 = vector.load %arg2[%c2_19, %c0_20, %c0_21] : memref<3x32x512xbf16, #tpu.memory_space<vmem>>, vector<1x32x512xbf16>
    %23 = vector.shape_cast %22 : vector<1x32x512xbf16> to vector<32x512xbf16>
    %cst_22 = arith.constant dense<0.000000e+00> : vector<32x512xf32>
    %24 = tpu.matmul %21, %23, %cst_22 {dimension_numbers = #tpu.dot_dimension_numbers<[1], [0], [0], [1], [0, 0, 1, 1], [], []>} : vector<32x32xbf16>, vector<32x512xbf16>, vector<32x512xf32> -> vector<32x512xf32>
    %25 = arith.addf %17, %24 : vector<32x512xf32>
    %c0_23 = arith.constant 0 : index
    %c0_24 = arith.constant 0 : index
    %26 = vector.load %arg3[%c0_23, %c0_24] : memref<1x512xf32, #tpu.memory_space<vmem>>, vector<1x512xf32>
    %27 = vector.broadcast %26 : vector<1x512xf32> to vector<32x512xf32>
    %28 = arith.addf %25, %27 : vector<32x512xf32>
    %cst_25 = arith.constant 0.000000e+00 : f32
    %29 = vector.broadcast %cst_25 : f32 to vector<32x512xf32>
    %30 = arith.maximumf %28, %29 : vector<32x512xf32>
    %31 = arith.truncf %30 : vector<32x512xf32> to vector<32x512xbf16>
    %cst_26 = arith.constant 0.000000e+00 : f32
    %32 = vector.broadcast %cst_26 : f32 to vector<16x256xf32>
    %c0_27 = arith.constant 0 : index
    %c0_28 = arith.constant 0 : index
    %c0_29 = arith.constant 0 : index
    %33 = vector.load %arg4[%c0_27, %c0_28, %c0_29] : memref<3x16x32xbf16, #tpu.memory_space<vmem>>, vector<1x16x32xbf16>
    %34 = vector.shape_cast %33 : vector<1x16x32xbf16> to vector<16x32xbf16>
    %cst_30 = arith.constant dense<0.000000e+00> : vector<16x512xf32>
    %35 = tpu.matmul %34, %31, %cst_30 {dimension_numbers = #tpu.dot_dimension_numbers<[1], [0], [0], [1], [0, 0, 1, 1], [], []>} : vector<16x32xbf16>, vector<32x512xbf16>, vector<16x512xf32> -> vector<16x512xf32>
    %36 = arith.truncf %35 : vector<16x512xf32> to vector<16x512xbf16>
    %c0_31 = arith.constant 0 : index
    %c0_32 = arith.constant 0 : index
    %c0_33 = arith.constant 0 : index
    %37 = vector.load %arg5[%c0_31, %c0_32, %c0_33] : memref<3x512x256xbf16, #tpu.memory_space<vmem>>, vector<1x512x256xbf16>
    %38 = vector.shape_cast %37 : vector<1x512x256xbf16> to vector<512x256xbf16>
    %cst_34 = arith.constant dense<0.000000e+00> : vector<16x256xf32>
    %39 = tpu.matmul %36, %38, %cst_34 {dimension_numbers = #tpu.dot_dimension_numbers<[1], [0], [0], [1], [0, 0, 1, 1], [], []>} : vector<16x512xbf16>, vector<512x256xbf16>, vector<16x256xf32> -> vector<16x256xf32>
    %40 = arith.addf %32, %39 : vector<16x256xf32>
    %c1_35 = arith.constant 1 : index
    %c0_36 = arith.constant 0 : index
    %c0_37 = arith.constant 0 : index
    %41 = vector.load %arg4[%c1_35, %c0_36, %c0_37] : memref<3x16x32xbf16, #tpu.memory_space<vmem>>, vector<1x16x32xbf16>
    %42 = vector.shape_cast %41 : vector<1x16x32xbf16> to vector<16x32xbf16>
    %cst_38 = arith.constant dense<0.000000e+00> : vector<16x512xf32>
    %43 = tpu.matmul %42, %31, %cst_38 {dimension_numbers = #tpu.dot_dimension_numbers<[1], [0], [0], [1], [0, 0, 1, 1], [], []>} : vector<16x32xbf16>, vector<32x512xbf16>, vector<16x512xf32> -> vector<16x512xf32>
    %44 = arith.truncf %43 : vector<16x512xf32> to vector<16x512xbf16>
    %c1_39 = arith.constant 1 : index
    %c0_40 = arith.constant 0 : index
    %c0_41 = arith.constant 0 : index
    %45 = vector.load %arg5[%c1_39, %c0_40, %c0_41] : memref<3x512x256xbf16, #tpu.memory_space<vmem>>, vector<1x512x256xbf16>
    %46 = vector.shape_cast %45 : vector<1x512x256xbf16> to vector<512x256xbf16>
    %cst_42 = arith.constant dense<0.000000e+00> : vector<16x256xf32>
    %47 = tpu.matmul %44, %46, %cst_42 {dimension_numbers = #tpu.dot_dimension_numbers<[1], [0], [0], [1], [0, 0, 1, 1], [], []>} : vector<16x512xbf16>, vector<512x256xbf16>, vector<16x256xf32> -> vector<16x256xf32>
    %48 = arith.addf %40, %47 : vector<16x256xf32>
    %c2_43 = arith.constant 2 : index
    %c0_44 = arith.constant 0 : index
    %c0_45 = arith.constant 0 : index
    %49 = vector.load %arg4[%c2_43, %c0_44, %c0_45] : memref<3x16x32xbf16, #tpu.memory_space<vmem>>, vector<1x16x32xbf16>
    %50 = vector.shape_cast %49 : vector<1x16x32xbf16> to vector<16x32xbf16>
    %cst_46 = arith.constant dense<0.000000e+00> : vector<16x512xf32>
    %51 = tpu.matmul %50, %31, %cst_46 {dimension_numbers = #tpu.dot_dimension_numbers<[1], [0], [0], [1], [0, 0, 1, 1], [], []>} : vector<16x32xbf16>, vector<32x512xbf16>, vector<16x512xf32> -> vector<16x512xf32>
    %52 = arith.truncf %51 : vector<16x512xf32> to vector<16x512xbf16>
    %c2_47 = arith.constant 2 : index
    %c0_48 = arith.constant 0 : index
    %c0_49 = arith.constant 0 : index
    %53 = vector.load %arg5[%c2_47, %c0_48, %c0_49] : memref<3x512x256xbf16, #tpu.memory_space<vmem>>, vector<1x512x256xbf16>
    %54 = vector.shape_cast %53 : vector<1x512x256xbf16> to vector<512x256xbf16>
    %cst_50 = arith.constant dense<0.000000e+00> : vector<16x256xf32>
    %55 = tpu.matmul %52, %54, %cst_50 {dimension_numbers = #tpu.dot_dimension_numbers<[1], [0], [0], [1], [0, 0, 1, 1], [], []>} : vector<16x512xbf16>, vector<512x256xbf16>, vector<16x256xf32> -> vector<16x256xf32>
    %56 = arith.addf %48, %55 : vector<16x256xf32>
    %c0_51 = arith.constant 0 : index
    %c0_52 = arith.constant 0 : index
    %57 = vector.load %arg6[%c0_51, %c0_52] : memref<1x256xf32, #tpu.memory_space<vmem>>, vector<1x256xf32>
    %58 = vector.broadcast %57 : vector<1x256xf32> to vector<16x256xf32>
    %59 = arith.addf %56, %58 : vector<16x256xf32>
    %cst_53 = arith.constant 0.000000e+00 : f32
    %60 = vector.broadcast %cst_53 : f32 to vector<16x256xf32>
    %61 = arith.maximumf %59, %60 : vector<16x256xf32>
    %62 = arith.truncf %61 : vector<16x256xf32> to vector<16x256xbf16>
    %cst_54 = arith.constant 0.000000e+00 : f32
    %63 = vector.broadcast %cst_54 : f32 to vector<8x256xf32>
    %c0_55 = arith.constant 0 : index
    %c0_56 = arith.constant 0 : index
    %c0_57 = arith.constant 0 : index
    %64 = vector.load %arg7[%c0_55, %c0_56, %c0_57] : memref<3x8x16xbf16, #tpu.memory_space<vmem>>, vector<1x8x16xbf16>
    %65 = vector.shape_cast %64 : vector<1x8x16xbf16> to vector<8x16xbf16>
    %cst_58 = arith.constant dense<0.000000e+00> : vector<8x256xf32>
    %66 = tpu.matmul %65, %62, %cst_58 {dimension_numbers = #tpu.dot_dimension_numbers<[1], [0], [0], [1], [0, 0, 1, 1], [], []>} : vector<8x16xbf16>, vector<16x256xbf16>, vector<8x256xf32> -> vector<8x256xf32>
    %67 = arith.truncf %66 : vector<8x256xf32> to vector<8x256xbf16>
    %c0_59 = arith.constant 0 : index
    %c0_60 = arith.constant 0 : index
    %c0_61 = arith.constant 0 : index
    %68 = vector.load %arg8[%c0_59, %c0_60, %c0_61] : memref<3x256x256xbf16, #tpu.memory_space<vmem>>, vector<1x256x256xbf16>
    %69 = vector.shape_cast %68 : vector<1x256x256xbf16> to vector<256x256xbf16>
    %cst_62 = arith.constant dense<0.000000e+00> : vector<8x256xf32>
    %70 = tpu.matmul %67, %69, %cst_62 {dimension_numbers = #tpu.dot_dimension_numbers<[1], [0], [0], [1], [0, 0, 1, 1], [], []>} : vector<8x256xbf16>, vector<256x256xbf16>, vector<8x256xf32> -> vector<8x256xf32>
    %71 = arith.addf %63, %70 : vector<8x256xf32>
    %c1_63 = arith.constant 1 : index
    %c0_64 = arith.constant 0 : index
    %c0_65 = arith.constant 0 : index
    %72 = vector.load %arg7[%c1_63, %c0_64, %c0_65] : memref<3x8x16xbf16, #tpu.memory_space<vmem>>, vector<1x8x16xbf16>
    %73 = vector.shape_cast %72 : vector<1x8x16xbf16> to vector<8x16xbf16>
    %cst_66 = arith.constant dense<0.000000e+00> : vector<8x256xf32>
    %74 = tpu.matmul %73, %62, %cst_66 {dimension_numbers = #tpu.dot_dimension_numbers<[1], [0], [0], [1], [0, 0, 1, 1], [], []>} : vector<8x16xbf16>, vector<16x256xbf16>, vector<8x256xf32> -> vector<8x256xf32>
    %75 = arith.truncf %74 : vector<8x256xf32> to vector<8x256xbf16>
    %c1_67 = arith.constant 1 : index
    %c0_68 = arith.constant 0 : index
    %c0_69 = arith.constant 0 : index
    %76 = vector.load %arg8[%c1_67, %c0_68, %c0_69] : memref<3x256x256xbf16, #tpu.memory_space<vmem>>, vector<1x256x256xbf16>
    %77 = vector.shape_cast %76 : vector<1x256x256xbf16> to vector<256x256xbf16>
    %cst_70 = arith.constant dense<0.000000e+00> : vector<8x256xf32>
    %78 = tpu.matmul %75, %77, %cst_70 {dimension_numbers = #tpu.dot_dimension_numbers<[1], [0], [0], [1], [0, 0, 1, 1], [], []>} : vector<8x256xbf16>, vector<256x256xbf16>, vector<8x256xf32> -> vector<8x256xf32>
    %79 = arith.addf %71, %78 : vector<8x256xf32>
    %c2_71 = arith.constant 2 : index
    %c0_72 = arith.constant 0 : index
    %c0_73 = arith.constant 0 : index
    %80 = vector.load %arg7[%c2_71, %c0_72, %c0_73] : memref<3x8x16xbf16, #tpu.memory_space<vmem>>, vector<1x8x16xbf16>
    %81 = vector.shape_cast %80 : vector<1x8x16xbf16> to vector<8x16xbf16>
    %cst_74 = arith.constant dense<0.000000e+00> : vector<8x256xf32>
    %82 = tpu.matmul %81, %62, %cst_74 {dimension_numbers = #tpu.dot_dimension_numbers<[1], [0], [0], [1], [0, 0, 1, 1], [], []>} : vector<8x16xbf16>, vector<16x256xbf16>, vector<8x256xf32> -> vector<8x256xf32>
    %83 = arith.truncf %82 : vector<8x256xf32> to vector<8x256xbf16>
    %c2_75 = arith.constant 2 : index
    %c0_76 = arith.constant 0 : index
    %c0_77 = arith.constant 0 : index
    %84 = vector.load %arg8[%c2_75, %c0_76, %c0_77] : memref<3x256x256xbf16, #tpu.memory_space<vmem>>, vector<1x256x256xbf16>
    %85 = vector.shape_cast %84 : vector<1x256x256xbf16> to vector<256x256xbf16>
    %cst_78 = arith.constant dense<0.000000e+00> : vector<8x256xf32>
    %86 = tpu.matmul %83, %85, %cst_78 {dimension_numbers = #tpu.dot_dimension_numbers<[1], [0], [0], [1], [0, 0, 1, 1], [], []>} : vector<8x256xbf16>, vector<256x256xbf16>, vector<8x256xf32> -> vector<8x256xf32>
    %87 = arith.addf %79, %86 : vector<8x256xf32>
    %c0_79 = arith.constant 0 : index
    %c0_80 = arith.constant 0 : index
    %88 = vector.load %arg9[%c0_79, %c0_80] : memref<1x256xf32, #tpu.memory_space<vmem>>, vector<1x256xf32>
    %89 = vector.broadcast %88 : vector<1x256xf32> to vector<8x256xf32>
    %90 = arith.addf %87, %89 : vector<8x256xf32>
    %cst_81 = arith.constant 0.000000e+00 : f32
    %91 = vector.broadcast %cst_81 : f32 to vector<8x256xf32>
    %92 = arith.maximumf %90, %91 : vector<8x256xf32>
    %93 = arith.truncf %92 : vector<8x256xf32> to vector<8x256xbf16>
    %cst_82 = arith.constant 0.000000e+00 : f32
    %94 = vector.broadcast %cst_82 : f32 to vector<4x128xf32>
    %c0_83 = arith.constant 0 : index
    %c0_84 = arith.constant 0 : index
    %c0_85 = arith.constant 0 : index
    %95 = vector.load %arg10[%c0_83, %c0_84, %c0_85] : memref<3x4x8xbf16, #tpu.memory_space<vmem>>, vector<1x4x8xbf16>
    %96 = vector.shape_cast %95 : vector<1x4x8xbf16> to vector<4x8xbf16>
    %cst_86 = arith.constant dense<0.000000e+00> : vector<4x256xf32>
    %97 = tpu.matmul %96, %93, %cst_86 {dimension_numbers = #tpu.dot_dimension_numbers<[1], [0], [0], [1], [0, 0, 1, 1], [], []>} : vector<4x8xbf16>, vector<8x256xbf16>, vector<4x256xf32> -> vector<4x256xf32>
    %98 = arith.truncf %97 : vector<4x256xf32> to vector<4x256xbf16>
    %c0_87 = arith.constant 0 : index
    %c0_88 = arith.constant 0 : index
    %c0_89 = arith.constant 0 : index
    %99 = vector.load %arg11[%c0_87, %c0_88, %c0_89] : memref<3x256x128xbf16, #tpu.memory_space<vmem>>, vector<1x256x128xbf16>
    %100 = vector.shape_cast %99 : vector<1x256x128xbf16> to vector<256x128xbf16>
    %cst_90 = arith.constant dense<0.000000e+00> : vector<4x128xf32>
    %101 = tpu.matmul %98, %100, %cst_90 {dimension_numbers = #tpu.dot_dimension_numbers<[1], [0], [0], [1], [0, 0, 1, 1], [], []>} : vector<4x256xbf16>, vector<256x128xbf16>, vector<4x128xf32> -> vector<4x128xf32>
    %102 = arith.addf %94, %101 : vector<4x128xf32>
    %c1_91 = arith.constant 1 : index
    %c0_92 = arith.constant 0 : index
    %c0_93 = arith.constant 0 : index
    %103 = vector.load %arg10[%c1_91, %c0_92, %c0_93] : memref<3x4x8xbf16, #tpu.memory_space<vmem>>, vector<1x4x8xbf16>
    %104 = vector.shape_cast %103 : vector<1x4x8xbf16> to vector<4x8xbf16>
    %cst_94 = arith.constant dense<0.000000e+00> : vector<4x256xf32>
    %105 = tpu.matmul %104, %93, %cst_94 {dimension_numbers = #tpu.dot_dimension_numbers<[1], [0], [0], [1], [0, 0, 1, 1], [], []>} : vector<4x8xbf16>, vector<8x256xbf16>, vector<4x256xf32> -> vector<4x256xf32>
    %106 = arith.truncf %105 : vector<4x256xf32> to vector<4x256xbf16>
    %c1_95 = arith.constant 1 : index
    %c0_96 = arith.constant 0 : index
    %c0_97 = arith.constant 0 : index
    %107 = vector.load %arg11[%c1_95, %c0_96, %c0_97] : memref<3x256x128xbf16, #tpu.memory_space<vmem>>, vector<1x256x128xbf16>
    %108 = vector.shape_cast %107 : vector<1x256x128xbf16> to vector<256x128xbf16>
    %cst_98 = arith.constant dense<0.000000e+00> : vector<4x128xf32>
    %109 = tpu.matmul %106, %108, %cst_98 {dimension_numbers = #tpu.dot_dimension_numbers<[1], [0], [0], [1], [0, 0, 1, 1], [], []>} : vector<4x256xbf16>, vector<256x128xbf16>, vector<4x128xf32> -> vector<4x128xf32>
    %110 = arith.addf %102, %109 : vector<4x128xf32>
    %c2_99 = arith.constant 2 : index
    %c0_100 = arith.constant 0 : index
    %c0_101 = arith.constant 0 : index
    %111 = vector.load %arg10[%c2_99, %c0_100, %c0_101] : memref<3x4x8xbf16, #tpu.memory_space<vmem>>, vector<1x4x8xbf16>
    %112 = vector.shape_cast %111 : vector<1x4x8xbf16> to vector<4x8xbf16>
    %cst_102 = arith.constant dense<0.000000e+00> : vector<4x256xf32>
    %113 = tpu.matmul %112, %93, %cst_102 {dimension_numbers = #tpu.dot_dimension_numbers<[1], [0], [0], [1], [0, 0, 1, 1], [], []>} : vector<4x8xbf16>, vector<8x256xbf16>, vector<4x256xf32> -> vector<4x256xf32>
    %114 = arith.truncf %113 : vector<4x256xf32> to vector<4x256xbf16>
    %c2_103 = arith.constant 2 : index
    %c0_104 = arith.constant 0 : index
    %c0_105 = arith.constant 0 : index
    %115 = vector.load %arg11[%c2_103, %c0_104, %c0_105] : memref<3x256x128xbf16, #tpu.memory_space<vmem>>, vector<1x256x128xbf16>
    %116 = vector.shape_cast %115 : vector<1x256x128xbf16> to vector<256x128xbf16>
    %cst_106 = arith.constant dense<0.000000e+00> : vector<4x128xf32>
    %117 = tpu.matmul %114, %116, %cst_106 {dimension_numbers = #tpu.dot_dimension_numbers<[1], [0], [0], [1], [0, 0, 1, 1], [], []>} : vector<4x256xbf16>, vector<256x128xbf16>, vector<4x128xf32> -> vector<4x128xf32>
    %118 = arith.addf %110, %117 : vector<4x128xf32>
    %c0_107 = arith.constant 0 : index
    %c0_108 = arith.constant 0 : index
    %119 = vector.load %arg12[%c0_107, %c0_108] : memref<1x128xf32, #tpu.memory_space<vmem>>, vector<1x128xf32>
    %120 = vector.broadcast %119 : vector<1x128xf32> to vector<4x128xf32>
    %121 = arith.addf %118, %120 : vector<4x128xf32>
    %cst_109 = arith.constant 0.000000e+00 : f32
    %122 = vector.broadcast %cst_109 : f32 to vector<4x128xf32>
    %123 = arith.maximumf %121, %122 : vector<4x128xf32>
    %124 = arith.truncf %123 : vector<4x128xf32> to vector<4x128xbf16>
    %cst_110 = arith.constant 0.000000e+00 : f32
    %125 = vector.broadcast %cst_110 : f32 to vector<2x128xf32>
    %c0_111 = arith.constant 0 : index
    %c0_112 = arith.constant 0 : index
    %c0_113 = arith.constant 0 : index
    %126 = vector.load %arg13[%c0_111, %c0_112, %c0_113] : memref<2x2x4xbf16, #tpu.memory_space<vmem>>, vector<1x2x4xbf16>
    %127 = vector.shape_cast %126 : vector<1x2x4xbf16> to vector<2x4xbf16>
    %cst_114 = arith.constant dense<0.000000e+00> : vector<2x128xf32>
    %128 = tpu.matmul %127, %124, %cst_114 {dimension_numbers = #tpu.dot_dimension_numbers<[1], [0], [0], [1], [0, 0, 1, 1], [], []>} : vector<2x4xbf16>, vector<4x128xbf16>, vector<2x128xf32> -> vector<2x128xf32>
    %129 = arith.truncf %128 : vector<2x128xf32> to vector<2x128xbf16>
    %c0_115 = arith.constant 0 : index
    %c0_116 = arith.constant 0 : index
    %c0_117 = arith.constant 0 : index
    %130 = vector.load %arg14[%c0_115, %c0_116, %c0_117] : memref<2x128x128xbf16, #tpu.memory_space<vmem>>, vector<1x128x128xbf16>
    %131 = vector.shape_cast %130 : vector<1x128x128xbf16> to vector<128x128xbf16>
    %cst_118 = arith.constant dense<0.000000e+00> : vector<2x128xf32>
    %132 = tpu.matmul %129, %131, %cst_118 {dimension_numbers = #tpu.dot_dimension_numbers<[1], [0], [0], [1], [0, 0, 1, 1], [], []>} : vector<2x128xbf16>, vector<128x128xbf16>, vector<2x128xf32> -> vector<2x128xf32>
    %133 = arith.addf %125, %132 : vector<2x128xf32>
    %c1_119 = arith.constant 1 : index
    %c0_120 = arith.constant 0 : index
    %c0_121 = arith.constant 0 : index
    %134 = vector.load %arg13[%c1_119, %c0_120, %c0_121] : memref<2x2x4xbf16, #tpu.memory_space<vmem>>, vector<1x2x4xbf16>
    %135 = vector.shape_cast %134 : vector<1x2x4xbf16> to vector<2x4xbf16>
    %cst_122 = arith.constant dense<0.000000e+00> : vector<2x128xf32>
    %136 = tpu.matmul %135, %124, %cst_122 {dimension_numbers = #tpu.dot_dimension_numbers<[1], [0], [0], [1], [0, 0, 1, 1], [], []>} : vector<2x4xbf16>, vector<4x128xbf16>, vector<2x128xf32> -> vector<2x128xf32>
    %137 = arith.truncf %136 : vector<2x128xf32> to vector<2x128xbf16>
    %c1_123 = arith.constant 1 : index
    %c0_124 = arith.constant 0 : index
    %c0_125 = arith.constant 0 : index
    %138 = vector.load %arg14[%c1_123, %c0_124, %c0_125] : memref<2x128x128xbf16, #tpu.memory_space<vmem>>, vector<1x128x128xbf16>
    %139 = vector.shape_cast %138 : vector<1x128x128xbf16> to vector<128x128xbf16>
    %cst_126 = arith.constant dense<0.000000e+00> : vector<2x128xf32>
    %140 = tpu.matmul %137, %139, %cst_126 {dimension_numbers = #tpu.dot_dimension_numbers<[1], [0], [0], [1], [0, 0, 1, 1], [], []>} : vector<2x128xbf16>, vector<128x128xbf16>, vector<2x128xf32> -> vector<2x128xf32>
    %141 = arith.addf %133, %140 : vector<2x128xf32>
    %c0_127 = arith.constant 0 : index
    %c0_128 = arith.constant 0 : index
    %142 = vector.load %arg15[%c0_127, %c0_128] : memref<1x128xf32, #tpu.memory_space<vmem>>, vector<1x128xf32>
    %143 = vector.broadcast %142 : vector<1x128xf32> to vector<2x128xf32>
    %144 = arith.addf %141, %143 : vector<2x128xf32>
    %c0_129 = arith.constant 0 : index
    %c0_130 = arith.constant 0 : index
    %145 = vector.load %arg16[%c0_129, %c0_130] : memref<2x128xf32, #tpu.memory_space<vmem>>, vector<2x128xf32>
    tpu.vector_store %arg16[%c0_129, %c0_130], %144 {strides = array<i32>} : memref<2x128xf32, #tpu.memory_space<vmem>>, vector<2x128xf32>,
    return
  }
}

</mosaic_0001>

<bundles_post_ra>
// kernel: forward.1
= control target key start
LH: loop header
LB: loop body
LE: loop exit
PB: predicated region body
PF: predicated region fallthrough
CT: control target
= control target key end

     0   :  { %s6255_s0 = inlined_call_operand.vmem [shape: bf16[64,32], index: 0, kind: input, shape index: {}]   ;;  %s6256_s1 = inlined_call_operand.vmem [shape: bf16[3,32,64], index: 1, kind: input, shape index: {}]   ;;  %s6257_s2 = inlined_call_operand.hbm [shape: bf16[3,32,512], index: 2, kind: input, shape index: {}]   ;;  %s6258_s3 = inlined_call_operand.vmem [shape: f32[1,512], index: 3, kind: input, shape index: {}]   ;;  %s6259_s4 = inlined_call_operand.vmem [shape: bf16[3,16,32], index: 4, kind: input, shape index: {}]   ;;  %s6260_s5 = inlined_call_operand.hbm [shape: bf16[3,512,256], index: 5, kind: input, shape index: {}]   ;;  %s6261_s6 = inlined_call_operand.vmem [shape: f32[1,256], index: 6, kind: input, shape index: {}, may-alias: {6,9}]   ;;  %s6262_s7 = inlined_call_operand.vmem [shape: bf16[3,8,16], index: 7, kind: input, shape index: {}]   ;;  %s6263_s8 = inlined_call_operand.hbm [shape: bf16[3,256,256], index: 8, kind: input, shape index: {}]   ;;  %s6264_s9 = inlined_call_operand.vmem [shape: f32[1,256], index: 9, kind: input, shape index: {}, may-alias: {6,9}]   ;;  %s6265_s10 = inlined_call_operand.vmem [shape: bf16[3,4,8], index: 10, kind: input, shape index: {}]   ;;  %s6266_s11 = inlined_call_operand.hbm [shape: bf16[3,256,128], index: 11, kind: input, shape index: {}]   ;;  %s6267_s12 = inlined_call_operand.vmem [shape: f32[1,128], index: 12, kind: input, shape index: {}, may-alias: {12,15}]   ;;  %s6268_s13 = inlined_call_operand.vmem [shape: bf16[2,2,4], index: 13, kind: input, shape index: {}]   ;;  %s6269_s14 = inlined_call_operand.hbm [shape: bf16[2,128,128], index: 14, kind: input, shape index: {}]   ;;  %s6270_s15 = inlined_call_operand.vmem [shape: f32[1,128], index: 15, kind: input, shape index: {}, may-alias: {12,15}]   ;;  %s6271_s16 = inlined_call_operand.hbm [shape: f32[2,128], index: 16, kind: output, shape index: {}]  }
   0x1   :  { %6273 = sst [smem:[#allocation16_spill]] %s6255_s0 }
   0x2   :  { %21 = vsyncpa [#allocation3], 0 }
   0x3   :  { %22 = vsyncpa [#allocation6], 0 }
   0x4   :  { %23 = vsyncpa [#allocation9], 0 }
   0x5   :  { %24 = vsyncpa [#allocation4], 0  ;;  %s5865_s21 = smov [#allocation5]  }
   0x6   :  { %s50_s22 = sshll.u32 %s5865_s21, 4  ;;  %s51_s22 = int_to_ptr.vmem [resolvable:$true] %s50_s22 }
   0x7   :  { %s5745_s23 = scalar_lea.vmem %s51_s22, 24576  ;;  %p5750_p1 = scmp.lt.s32.totalorder %s51_s22, %s51_s22 }
   0x8   :  { %p5746_p0 = scmp.ne.s32.totalorder %s51_s22, %s5745_s23  ;;  %p5751_p2 = scmp.lt.s32.totalorder %s5745_s23, %s5745_s23 }
   0xa   :  { %p5752_p3 = por %p5751_p2, %p5750_p1 }
   0xc   :  { %p5753_p4 = pnand %p5752_p3, %p5746_p0 }
   0xe   :  { %5756 = shalt.err (!%p5753_p4)
}
   0xf   :  { %s5866_s24 = smov 128   ;;  %s5867_s25 = smov 8  }
  0x10   :  { %56 = dma.hbm_to_vmem [thread:$0]  %s6260_s5, 24576, %s51_s22, [#allocation6], %s5866_s24, %s5866_s24, %s5867_s25  }
  0x11   :  { %s5868_s28 = smov [#allocation8]  }
  0x12   :  { %s82_s29 = sshll.u32 %s5868_s28, 4  ;;  %s83_s29 = int_to_ptr.vmem [resolvable:$true] %s82_s29 }
  0x13   :  { %s5765_s30 = scalar_lea.vmem %s83_s29, 6144  ;;  %p5770_p6 = scmp.lt.s32.totalorder %s83_s29, %s83_s29 }
  0x14   :  { %p5766_p5 = scmp.ne.s32.totalorder %s83_s29, %s5765_s30  ;;  %p5771_p7 = scmp.lt.s32.totalorder %s5765_s30, %s5765_s30 }
  0x16   :  { %p5772_p8 = por %p5771_p7, %p5770_p6 }
  0x18   :  { %p5773_p9 = pnand %p5772_p8, %p5766_p5 }
  0x1a   :  { %5776 = shalt.err (!%p5773_p9)
}
  0x1b   :  { %s5869_s0 = smov 64   ;;  %s5870_s17 = smov 4  }
  0x1c   :  { %88 = dma.hbm_to_vmem [thread:$0]  %s6266_s11, 6144, %s83_s29, [#allocation9], %s5869_s0, %s5869_s0, %s5870_s17  }
  0x1d   :  { %s5871_s5 = smov [#allocation2]  }
  0x1e   :  { %s34_s20 = sshll.u32 %s5871_s5, 4  ;;  %s35_s20 = int_to_ptr.vmem [resolvable:$true] %s34_s20 }
  0x1f   :  { %s5785_s21 = scalar_lea.vmem %s35_s20, 3072  ;;  %p5790_p11 = scmp.lt.s32.totalorder %s35_s20, %s35_s20 }
  0x20   :  { %p5786_p10 = scmp.ne.s32.totalorder %s35_s20, %s5785_s21  ;;  %p5791_p12 = scmp.lt.s32.totalorder %s5785_s21, %s5785_s21 }
  0x22   :  { %p5792_p13 = por %p5791_p12, %p5790_p11 }
  0x24   :  { %p5793_p0 = pnand %p5792_p13, %p5786_p10 }
  0x26   :  { %5796 = shalt.err (!%p5793_p0)
}
  0x27   :  { %s5872_s22 = smov 256   ;;  %s5873_s23 = smov 16  }
  0x28   :  { %40 = dma.hbm_to_vmem [thread:$0]  %s6257_s2, 3072, %s35_s20, [#allocation3], %s5872_s22, %s5872_s22, %s5873_s23  }
  0x29   :  { %s5874_s28 = smov [#allocation7]   ;;  %s5875_s11 = smov [#allocation10]  }
  0x2a   :  { %s66_s30 = sshll.u32 %s5874_s28, 4  ;;  %s98_s29 = sshll.u32 %s5875_s11, 4  ;;  %s67_s30 = int_to_ptr.vmem [resolvable:$true] %s66_s30  ;;  %s99_s29 = int_to_ptr.vmem [resolvable:$true] %s98_s29 }
  0x2b   :  { %s5805_s18 = scalar_lea.vmem %s67_s30, 12288  ;;  %p5810_p2 = scmp.lt.s32.totalorder %s67_s30, %s67_s30 }
  0x2c   :  { %p5806_p1 = scmp.ne.s32.totalorder %s67_s30, %s5805_s18  ;;  %p5811_p3 = scmp.lt.s32.totalorder %s5805_s18, %s5805_s18 }
  0x2e   :  { %p5812_p4 = por %p5811_p3, %p5810_p2 }
  0x30   :  { %p5813_p5 = pnand %p5812_p4, %p5806_p1 }
  0x32   :  { %5816 = shalt.err (!%p5813_p5)
}
  0x33   :  { %72 = dma.hbm_to_vmem [thread:$0]  %s6263_s8, 12288, %s67_s30, [#allocation6], %s5866_s24, %s5866_s24, %s5867_s25  }
  0x34   :  { %s5825_s2 = scalar_lea.vmem %s99_s29, 2048  ;;  %p5830_p7 = scmp.lt.s32.totalorder %s99_s29, %s99_s29 }
  0x35   :  { %p5826_p6 = scmp.ne.s32.totalorder %s99_s29, %s5825_s2  ;;  %p5831_p8 = scmp.lt.s32.totalorder %s5825_s2, %s5825_s2 }
  0x37   :  { %p5832_p9 = por %p5831_p8, %p5830_p7 }
  0x39   :  { %p5833_p10 = pnand %p5832_p9, %p5826_p6 }
  0x3b   :  { %5836 = shalt.err (!%p5833_p10)
}
  0x3c   :  { %104 = dma.hbm_to_vmem [thread:$0]  %s6269_s14, 2048, %s99_s29, [#allocation9], %s5869_s0, %s5869_s0, %s5870_s17  }
  0x3d   :  { %5857 = dma.done.wait [#allocation3], 3072  }
  0x3e   :  { %5858 = vsyncadd [#allocation3], 4294964224 }
  0x3f   :  { %5859 = dma.done.wait [#allocation6], 36864  }
  0x40   :  { %5860 = vsyncadd [#allocation6], 4294930432 }
  0x41   :  { %5861 = dma.done.wait [#allocation9], 8192  }
  0x42   :  { %5862 = vsyncadd [#allocation9], 4294959104  ;;  %s6274_s25 = sld [smem:[#allocation16_spill]]  ;;  %vm169_vm0 = vcmask 523264   ;;  %v5192_v3 = vld [vmem:[%s6256_s1 + $0x10] sm:$0xff]   ;;  %v5194_v4 = vld [vmem:[%s6256_s1] sm:$0xff]  }
  0x43   :  { %5105 = vmatprep.mubr.msk.bf16.mxu1 %vm169_vm0, %v5192_v3  ;;  %5093 = vmatprep.mubr.msk.bf16.mxu0 %vm169_vm0, %v5194_v4  ;;  %v5193_v6 = vld [vmem:[%s6256_s1 + $0x18] sm:$0xff]   ;;  %v5195_v7 = vld [vmem:[%s6256_s1 + $0x8] sm:$0xff]   ;;  %v5198_v8 = vld [vmem:[#allocation2 + $0x64] ss:$16 sps:$4 sm:$0xff]   ;;  %v5876_v16 = vmov 0   ;;  %vm356_vm1 = vcmask 261120  }
  0x44   :  { %v5201_v9 = vld [vmem:[#allocation2 + $0x6c] ss:$16 sps:$4 sm:$0xff]   ;;  %v5196_v10 = vld [vmem:[#allocation2 + $0x60] ss:$16 sps:$4 sm:$0xff]   ;;  %v5199_v11 = vld [vmem:[#allocation2 + $0x68] ss:$16 sps:$4 sm:$0xff]  }
  0x45   :  { %v5204_v12 = vld [vmem:[#allocation2 + $0x44] ss:$16 sps:$4 sm:$0xff]   ;;  %v5207_v13 = vld [vmem:[#allocation2 + $0x4c] ss:$16 sps:$4 sm:$0xff]   ;;  %v5202_v14 = vld [vmem:[#allocation2 + $0x40] ss:$16 sps:$4 sm:$0xff]  }
  0x46   :  { %v5205_v15 = vld [vmem:[#allocation2 + $0x48] ss:$16 sps:$4 sm:$0xff]   ;;  %v5210_v17 = vld [vmem:[#allocation2 + $0x24] ss:$16 sps:$4 sm:$0xff]   ;;  %v5213_v18 = vld [vmem:[#allocation2 + $0x2c] ss:$16 sps:$4 sm:$0xff]  }
  0x47   :  { %v5208_v24 = vld [vmem:[#allocation2 + $0x20] ss:$16 sps:$4 sm:$0xff]   ;;  %v5211_v25 = vld [vmem:[#allocation2 + $0x28] ss:$16 sps:$4 sm:$0xff]   ;;  %v5216_v27 = vld [vmem:[#allocation2 + $0x4] ss:$16 sps:$4 sm:$0xff]  }
  0x48   :  { %v5188_v0 = vld [vmem:[%s6274_s25 + $0x18] sm:$0xff]   ;;  %v5189_v1 = vld [vmem:[%s6274_s25 + $0x10] sm:$0xff]   ;;  %v5190_v2 = vld [vmem:[%s6274_s25 + $0x8] sm:$0xff]   ;;  %vm2673_vm2 = vcmask 130048   ;;  %vm3542_vm3 = vcmask 1043456   ;;  %vm3538_vm4 = vcmask 64512  }
  0x49   :  { %5097 = vmatprep.subr.bf16.mxu1 %v5188_v0  ;;  %5085 = vmatprep.subr.bf16.mxu0 %v5188_v0  ;;  %v5191_v5 = vld [vmem:[%s6274_s25] sm:$0xff]   ;;  %v5219_v28 = vld [vmem:[#allocation2 + $0xc] ss:$16 sps:$4 sm:$0xff]   ;;  %v5217_v30 = vld [vmem:[#allocation2 + $0x8] ss:$16 sps:$4 sm:$0xff]   ;;  %vm5878_vm5 = vmmov 0  }
  0x4a   :  { %5098 = vmatpush3.bf16.msra.mxu1 %v5188_v0  ;;  %5086 = vmatpush3.bf16.msra.mxu0 %v5188_v0  ;;  %v5214_v29 = vld [vmem:[#allocation2] ss:$16 sps:$4 sm:$0xff]   ;;  %v5733_v34 = vld [vmem:[%s6274_s25 + $0x18] sm:$0xff]   ;;  %v5735_v40 = vld [vmem:[%s6274_s25 + $0x8] sm:$0xff]   ;;  %vm4210_vm6 = vcmask 1041408   ;;  %vm4206_vm7 = vcmask 31744  }
  0x4b   :  { %5099 = vmatprep.subr.bf16.mxu1 %v5189_v1  ;;  %5087 = vmatprep.subr.bf16.mxu0 %v5189_v1  ;;  %v5734_v37 = vld [vmem:[%s6274_s25 + $0x10] sm:$0xff]   ;;  %v5220_v38 = vld [vmem:[%s6256_s1 + $0x20] sm:$0xff]   ;;  %v5221_v42 = vld [vmem:[%s6256_s1 + $0x28] sm:$0xff]   ;;  %s5879_s28 = smov [#allocation11]  }
  0x4c   :  { %v5736_v41 = vld [vmem:[%s6274_s25] sm:$0xff]   ;;  %v5227_v44 = vld [vmem:[#allocation2 + $0xac] ss:$16 sps:$4 sm:$0xff]   ;;  %v5225_v46 = vld [vmem:[#allocation2 + $0xa8] ss:$16 sps:$4 sm:$0xff]   ;;  %s4525_s30 = sshll.u32 %s5879_s28, 4  ;;  %s4526_s30 = int_to_ptr.vmem [resolvable:$true] %s4525_s30 }
  0x4d   :  { %v5224_v43 = vld [vmem:[#allocation2 + $0xa4] ss:$16 sps:$4 sm:$0xff]   ;;  %v5222_v45 = vld [vmem:[#allocation2 + $0xa0] ss:$16 sps:$4 sm:$0xff]   ;;  %v5233_v48 = vld [vmem:[#allocation2 + $0x8c] ss:$16 sps:$4 sm:$0xff]   ;;  %p5842_p12 = scmp.lt.s32.totalorder %s4526_s30, %s4526_s30 }
  0x4e   :  { %5100 = vmatpush3.bf16.msra.mxu1 %v5189_v1  ;;  %5088 = vmatpush3.bf16.msra.mxu0 %v5189_v1  ;;  %v5230_v47 = vld [vmem:[#allocation2 + $0x84] ss:$16 sps:$4 sm:$0xff]   ;;  %v5228_v49 = vld [vmem:[#allocation2 + $0x80] ss:$16 sps:$4 sm:$0xff]   ;;  %v5231_v50 = vld [vmem:[#allocation2 + $0x88] ss:$16 sps:$4 sm:$0xff]  }
  0x4f   :  { %5101 = vmatprep.subr.bf16.mxu1 %v5190_v2  ;;  %5089 = vmatprep.subr.bf16.mxu0 %v5190_v2  ;;  %s5837_s11 = scalar_lea.vmem %s4526_s30, 32 }
  0x50   :  { %p5838_p11 = scmp.ne.s32.totalorder %s4526_s30, %s5837_s11  ;;  %p5843_p13 = scmp.lt.s32.totalorder %s5837_s11, %s5837_s11 }
  0x52   :  { %5102 = vmatpush3.bf16.msra.mxu1 %v5190_v2  ;;  %5090 = vmatpush3.bf16.msra.mxu0 %v5190_v2  ;;  %p5844_p0 = por %p5843_p13, %p5842_p12 }
  0x53   :  { %5103 = vmatprep.subr.bf16.mxu1 %v5191_v5  ;;  %5091 = vmatprep.subr.bf16.mxu0 %v5191_v5 }
  0x54   :  { %p5845_p1 = pnand %p5844_p0, %p5838_p11 }
  0x56   :  { %5104 = vmatpush3.bf16.msra.mxu1 %v5191_v5  ;;  %5092 = vmatpush3.bf16.msra.mxu0 %v5191_v5 }
  0x57   :  { %375 = vmatprep.subr.bf16.mxu0 %v5198_v8  ;;  %428 = vmatprep.subr.bf16.mxu1 %v5201_v9 }
  0x59   :  { %5106 = vmatmul.mubr.msk.bf16.vlgmr.msra.gmra.mxu1 %vm169_vm0, %v5193_v6  ;;  %5094 = vmatmul.mubr.msk.bf16.vlgmr.msra.gmra.mxu0 %vm169_vm0, %v5195_v7 }
  0x5a   :  { %376 = vmatpush1.bf16.msra.mxu0 %v5196_v10  ;;  %429 = vmatpush1.bf16.msra.mxu1 %v5199_v11 }
  0x5b   :  { %377 = vmatprep.subr.bf16.mxu0 %v5204_v12  ;;  %430 = vmatprep.subr.bf16.mxu1 %v5207_v13 }
  0x5c   :  { %395 = vmatprep.mubr.bf16.mxu0 %v5876_v16  ;;  %448 = vmatprep.mubr.bf16.mxu1 %v5876_v16 }
  0x5e   :  { %378 = vmatpush1.bf16.msra.mxu0 %v5202_v14  ;;  %431 = vmatpush1.bf16.msra.mxu1 %v5205_v15 }
  0x5f   :  { %527 = vmatprep.subr.bf16.mxu0 %v5210_v17  ;;  %580 = vmatprep.subr.bf16.mxu1 %v5213_v18 }
 0x119   :  { %v5107_v19 = vpop.f32.mrf.mxu1  ;;  %v5095_v26 = vpop.f32.mrf.mxu0 }
 0x11b   :  { %v290_v20 = vpop.f32.mrf.mxu1  ;;  %v210_v31 = vpop.f32.mrf.mxu0 }
 0x11d   :  { %v5108_v21 = vpop.f32.mrf.mxu1  ;;  %v5096_v33 = vpop.f32.mrf.mxu0 }
 0x11e   :  { %v306_v32 = vpack.c.bf16 %v5108_v21, %v5107_v19  ;;  %v226_v39 = vpack.c.bf16 %v5096_v33, %v5095_v26 }
 0x11f   :  { %v293_v22 = vpop.f32.mrf.mxu1  ;;  %v213_v35 = vpop.f32.mrf.mxu0 }
 0x120   :  { %v305_v23 = vpack.c.bf16 %v293_v22, %v290_v20  ;;  %v225_v36 = vpack.c.bf16 %v213_v35, %v210_v31 }
 0x122   :  { %4560 = vmatmul.mubr.msk.bf16.vlgmr.msra.gmra.mxu0 %vm356_vm1, %v305_v23  ;;  %4562 = vmatmul.mubr.msk.bf16.vlgmr.msra.gmra.mxu1 %vm356_vm1, %v305_v23 }
 0x123   :  { %405 = vmatprep.mubr.bf16.mxu0 %v5876_v16  ;;  %458 = vmatprep.mubr.bf16.mxu1 %v5876_v16 }
 0x124   :  { %528 = vmatpush1.bf16.msra.mxu0 %v5208_v24  ;;  %581 = vmatpush1.bf16.msra.mxu1 %v5211_v25 }
 0x125   :  { %529 = vmatprep.subr.bf16.mxu0 %v5216_v27  ;;  %582 = vmatprep.subr.bf16.mxu1 %v5219_v28 }
 0x128   :  { %530 = vmatpush1.bf16.msra.mxu0 %v5214_v29  ;;  %583 = vmatpush1.bf16.msra.mxu1 %v5217_v30 }
 0x129   :  { %5109 = vmatprep.subr.bf16.mxu0 %v5733_v34  ;;  %760 = vmatprep.subr.bf16.mxu1 %v5224_v43 }
 0x12a   :  { %4561 = vmatmul.mubr.msk.bf16.gmra.mxu0 %vm356_vm1, %v306_v32  ;;  %4563 = vmatmul.mubr.msk.bf16.gmra.mxu1 %vm356_vm1, %v306_v32  ;;  %v872_v32 = vlaneseq }
 0x12b   :  { %547 = vmatprep.mubr.bf16.mxu0 %v5876_v16  ;;  %600 = vmatprep.mubr.bf16.mxu1 %v5876_v16 }
 0x132   :  { %4572 = vmatmul.mubr.msk.bf16.vlgmr.msra.gmra.mxu0 %vm356_vm1, %v225_v36  ;;  %4574 = vmatmul.mubr.msk.bf16.vlgmr.msra.gmra.mxu1 %vm356_vm1, %v225_v36 }
 0x133   :  { %5110 = vmatpush3.bf16.msra.mxu0 %v5733_v34  ;;  %557 = vmatprep.mubr.bf16.mxu0 %v5876_v16  ;;  %v873_v34 = vshrl.u32 %v872_v32, 7 }
 0x134   :  { %5111 = vmatprep.subr.bf16.mxu0 %v5734_v37  ;;  %610 = vmatprep.mubr.bf16.mxu1 %v5876_v16 }
 0x135   :  { %761 = vmatpush1.bf16.msra.mxu1 %v5222_v45  ;;  %v6076_v36 = vsub.s32 0, %v873_v34 }
 0x136   :  { %762 = vmatprep.subr.bf16.mxu1 %v5230_v47 }
 0x137   :  { %5112 = vmatpush3.bf16.msra.mxu0 %v5734_v37  ;;  %v870_v37 = vld [vmem:[%s6258_s3] sm:$0xf] }
 0x138   :  { %5113 = vmatprep.subr.bf16.mxu0 %v5735_v40 }
 0x139   :  { %763 = vmatpush1.bf16.msra.mxu1 %v5228_v49 }
 0x13a   :  { %4573 = vmatmul.mubr.msk.bf16.gmra.mxu0 %vm356_vm1, %v226_v39  ;;  %4575 = vmatmul.mubr.msk.bf16.gmra.mxu1 %vm356_vm1, %v226_v39 }
 0x13b   :  { %5114 = vmatpush3.bf16.msra.mxu0 %v5735_v40  ;;  %5117 = vmatprep.mubr.msk.bf16.mxu0 %vm169_vm0, %v5220_v38  ;;  %v6081_v38 = vsub.s32 1, %v873_v34 }
 0x13c   :  { %5115 = vmatprep.subr.bf16.mxu0 %v5736_v41  ;;  %780 = vmatprep.mubr.bf16.mxu1 %v5876_v16 }
 0x13f   :  { %5116 = vmatpush3.bf16.msra.mxu0 %v5736_v41 }
 0x140   :  { %813 = vmatprep.subr.bf16.mxu0 %v5227_v44 }
 0x142   :  { %5118 = vmatmul.mubr.msk.bf16.vlgmr.msra.gmra.mxu0 %vm169_vm0, %v5221_v42  ;;  %v875_v42 = vrot.slane %v870_v37, %v6076_v36 }
 0x143   :  { %833 = vmatprep.mubr.bf16.mxu0 %v5876_v16  ;;  %814 = vmatpush1.bf16.msra.mxu0 %v5225_v46  ;;  %v879_v46 = vrot.slane %v870_v37, %v6081_v38 }
 0x144   :  { %815 = vmatprep.subr.bf16.mxu0 %v5233_v48 }
 0x147   :  { %816 = vmatpush1.bf16.msra.mxu0 %v5231_v50 }
 0x1e2   :  { %v397_v51 = vpop.f32.mrf.mxu0  ;;  %v450_v18 = vpop.f32.mrf.mxu1 }
 0x1e4   :  { %v399_v52 = vpop.f32.mrf.mxu0  ;;  %v452_v19 = vpop.f32.mrf.mxu1 }
 0x1e6   :  { %v401_v53 = vpop.f32.mrf.mxu0  ;;  %v454_v20 = vpop.f32.mrf.mxu1 }
 0x1e8   :  { %v403_v54 = vpop.f32.mrf.mxu0  ;;  %v456_v21 = vpop.f32.mrf.mxu1 }
 0x1ea   :  { %v407_v55 = vpop.f32.mrf.mxu0  ;;  %v460_v22 = vpop.f32.mrf.mxu1 }
 0x1ec   :  { %v409_v56 = vpop.f32.mrf.mxu0  ;;  %v462_v23 = vpop.f32.mrf.mxu1 }
 0x1ee   :  { %v411_v57 = vpop.f32.mrf.mxu0  ;;  %v464_v24 = vpop.f32.mrf.mxu1 }
 0x1f0   :  { %v413_v58 = vpop.f32.mrf.mxu0  ;;  %v466_v25 = vpop.f32.mrf.mxu1 }
 0x1f2   :  { %v549_v59 = vpop.f32.mrf.mxu0  ;;  %v602_v26 = vpop.f32.mrf.mxu1 }
 0x1f3   :  { %v550_v60 = vadd.f32 %v549_v59, %v397_v51  ;;  %v603_v49 = vadd.f32 %v602_v26, %v450_v18 }
 0x1f4   :  { %v551_v61 = vpop.f32.mrf.mxu0  ;;  %v604_v27 = vpop.f32.mrf.mxu1 }
 0x1f5   :  { %v552_v62 = vadd.f32 %v551_v61, %v399_v52  ;;  %v605_v50 = vadd.f32 %v604_v27, %v452_v19  ;;  %v882_v52 = vsub.s32 2, %v873_v34 }
 0x1f6   :  { %v553_v63 = vpop.f32.mrf.mxu0  ;;  %v606_v28 = vpop.f32.mrf.mxu1 }
 0x1f7   :  { %v554_v0 = vadd.f32 %v553_v63, %v401_v53 }
 0x1f8   :  { %v555_v1 = vpop.f32.mrf.mxu0  ;;  %v608_v29 = vpop.f32.mrf.mxu1 }
 0x1f9   :  { %v6058_v2 = vadd.f32 %v555_v1, %v403_v54 }
 0x1fa   :  { %v559_v3 = vpop.f32.mrf.mxu0  ;;  %v612_v30 = vpop.f32.mrf.mxu1 }
 0x1fb   :  { %v6060_v4 = vadd.f32 %v559_v3, %v407_v55  ;;  %v613_v61 = vadd.f32 %v612_v30, %v460_v22 }
 0x1fc   :  { %v561_v5 = vpop.f32.mrf.mxu0  ;;  %v614_v31 = vpop.f32.mrf.mxu1 }
 0x1fd   :  { %v6062_v6 = vadd.f32 %v561_v5, %v409_v56  ;;  %v607_v56 = vadd.f32 %v606_v28, %v454_v20  ;;  %v615_v63 = vadd.f32 %v614_v31, %v462_v23 }
 0x1fe   :  { %v563_v7 = vpop.f32.mrf.mxu0  ;;  %v616_v33 = vpop.f32.mrf.mxu1 }
 0x1ff   :  { %v6064_v8 = vadd.f32 %v563_v7, %v411_v57  ;;  %v617_v5 = vadd.f32 %v616_v33, %v464_v24 }
 0x200   :  { %v565_v9 = vpop.f32.mrf.mxu0  ;;  %v618_v35 = vpop.f32.mrf.mxu1 }
 0x201   :  { %v6066_v10 = vadd.f32 %v565_v9, %v413_v58  ;;  %v886_v58 = vsub.s32 3, %v873_v34  ;;  %v619_v7 = vadd.f32 %v618_v35, %v466_v25 }
 0x202   :  { %v5119_v11 = vpop.f32.mrf.mxu0 }
 0x204   :  { %v676_v12 = vpop.f32.mrf.mxu0 }
 0x206   :  { %v5120_v13 = vpop.f32.mrf.mxu0 }
 0x207   :  { %v692_v17 = vpack.c.bf16 %v5120_v13, %v5119_v11 }
 0x208   :  { %v679_v14 = vpop.f32.mrf.mxu0 }
 0x209   :  { %v691_v15 = vpack.c.bf16 %v679_v14, %v676_v12 }
 0x20b   :  { %4592 = vmatmul.mubr.msk.bf16.vlgmr.msra.gmra.mxu1 %vm356_vm1, %v691_v15  ;;  %4594 = vmatmul.mubr.msk.bf16.vlgmr.msra.gmra.mxu0 %vm356_vm1, %v691_v15 }
 0x20c   :  { %790 = vmatprep.mubr.bf16.mxu1 %v5876_v16  ;;  %843 = vmatprep.mubr.bf16.mxu0 %v5876_v16 }
 0x213   :  { %4593 = vmatmul.mubr.msk.bf16.gmra.mxu1 %vm356_vm1, %v692_v17  ;;  %4595 = vmatmul.mubr.msk.bf16.gmra.mxu0 %vm356_vm1, %v692_v17 }
 0x214   :  { %974 = vmatprep.mubr.bf16.mxu1 %v5876_v16  ;;  %1017 = vmatprep.mubr.bf16.mxu0 %v5876_v16 }
 0x2cb   :  { %v782_v39 = vpop.f32.mrf.mxu1  ;;  %v835_v40 = vpop.f32.mrf.mxu0 }
 0x2cc   :  { %v854_v41 = vadd.f32 %v782_v39, %v550_v60  ;;  %v609_v60 = vadd.f32 %v608_v29, %v456_v21 }
 0x2cd   :  { %v784_v43 = vpop.f32.mrf.mxu1  ;;  %v837_v44 = vpop.f32.mrf.mxu0 }
 0x2ce   :  { %v855_v45 = vadd.f32 %v784_v43, %v552_v62  ;;  %v892_v51 = vadd.f32 %v875_v42, %v854_v41  ;;  %v857_v19 = vadd.f32 %v837_v44, %v605_v50  ;;  %v856_v43 = vadd.f32 %v835_v40, %v603_v49 }
 0x2cf   :  { %v786_v47 = vpop.f32.mrf.mxu1  ;;  %v839_v48 = vpop.f32.mrf.mxu0 }
 0x2d0   :  { %v858_v53 = vadd.f32 %v786_v47, %v554_v0  ;;  %v893_v57 = vadd.f32 %v879_v46, %v855_v45  ;;  %v908_v12 = vmax.f32 %v892_v51, 0.0  ;;  %v883_v0 = vrot.slane %v870_v37, %v882_v52 }
 0x2d1   :  { %v788_v54 = vpop.f32.mrf.mxu1  ;;  %v841_v55 = vpop.f32.mrf.mxu0  ;;  %v860_v27 = vadd.f32 %v839_v48, %v607_v56 }
 0x2d2   :  { %v859_v59 = vadd.f32 %v788_v54, %v6058_v2  ;;  %v896_v62 = vadd.f32 %v875_v42, %v858_v53  ;;  %v861_v14 = vadd.f32 %v841_v55, %v609_v60  ;;  %v909_v18 = vmax.f32 %v893_v57, 0.0 }
 0x2d3   :  { %v792_v1 = vpop.f32.mrf.mxu1  ;;  %v845_v3 = vpop.f32.mrf.mxu0  ;;  %v887_v2 = vrot.slane %v870_v37, %v886_v58  ;;  %v898_v51 = vadd.f32 %v883_v0, %v860_v27  ;;  %v894_v58 = vadd.f32 %v883_v0, %v856_v43  ;;  %v5263_v27 = vld [vmem:[#allocation5 + $0x330] ss:$8 sps:$4 sm:$0xff]   ;;  %v5286_v43 = vld [vmem:[#allocation5 + $0x2f4] ss:$8 sps:$4 sm:$0xff]  }
 0x2d4   :  { %v897_v9 = vadd.f32 %v879_v46, %v859_v59  ;;  %v862_v11 = vadd.f32 %v792_v1, %v6060_v4  ;;  %v912_v13 = vmax.f32 %v896_v62, 0.0  ;;  %v864_v22 = vadd.f32 %v845_v3, %v613_v61  ;;  %v5234_v1 = vld [vmem:[%s6259_s4] sm:$0xff]   ;;  %v5238_v3 = vld [vmem:[#allocation5 + $0x274] ss:$8 sps:$4 sm:$0xff]  }
 0x2d5   :  { %v794_v15 = vpop.f32.mrf.mxu1  ;;  %v847_v17 = vpop.f32.mrf.mxu0  ;;  %v899_v30 = vadd.f32 %v887_v2, %v861_v14  ;;  %v895_v44 = vadd.f32 %v887_v2, %v857_v19  ;;  %v914_v49 = vmax.f32 %v898_v51, 0.0  ;;  %v5245_v14 = vld [vmem:[#allocation5 + $0x360] ss:$8 sps:$4 sm:$0xff]   ;;  %v5251_v19 = vld [vmem:[#allocation5 + $0x350] ss:$8 sps:$4 sm:$0xff]  }
 0x2d6   :  { %v913_v20 = vmax.f32 %v897_v9, 0.0  ;;  %v6087_v21 = vpack.c.bf16 %v912_v13, %v908_v12  ;;  %v863_v23 = vadd.f32 %v794_v15, %v6062_v6  ;;  %v865_v24 = vadd.f32 %v847_v17, %v615_v63  ;;  %v5236_v9 = vld [vmem:[#allocation5 + $0x270] ss:$8 sps:$4 sm:$0xff]   ;;  %v5244_v12 = vld [vmem:[#allocation5 + $0x264] ss:$8 sps:$4 sm:$0xff]  }
 0x2d7   :  { %v796_v25 = vpop.f32.mrf.mxu1  ;;  %v849_v26 = vpop.f32.mrf.mxu0  ;;  %v900_v4 = vadd.f32 %v875_v42, %v862_v11  ;;  %v902_v45 = vadd.f32 %v883_v0, %v864_v22  ;;  %v915_v52 = vmax.f32 %v899_v30, 0.0  ;;  %v910_v63 = vmax.f32 %v894_v58, 0.0  ;;  %v5239_v11 = vld [vmem:[#allocation5 + $0x370] ss:$8 sps:$4 sm:$0xff]   ;;  %v5242_v13 = vld [vmem:[#allocation5 + $0x260] ss:$8 sps:$4 sm:$0xff]  }
 0x2d8   :  { %v866_v28 = vadd.f32 %v796_v25, %v6064_v8  ;;  %v868_v29 = vadd.f32 %v849_v26, %v617_v5  ;;  %v901_v31 = vadd.f32 %v879_v46, %v863_v23  ;;  %v903_v32 = vadd.f32 %v887_v2, %v865_v24  ;;  %v5241_v5 = vld [vmem:[#allocation5 + $0x374] ss:$8 sps:$4 sm:$0xff]   ;;  %v5254_v22 = vld [vmem:[#allocation5 + $0x240] ss:$8 sps:$4 sm:$0xff]   ;;  %v5260_v26 = vld [vmem:[#allocation5 + $0x230] ss:$8 sps:$4 sm:$0xff]  }
 0x2d9   :  { %v798_v33 = vpop.f32.mrf.mxu1  ;;  %v851_v34 = vpop.f32.mrf.mxu0  ;;  %v6091_v35 = vpack.c.bf16 %v913_v20, %v909_v18  ;;  %v916_v47 = vmax.f32 %v900_v4, 0.0  ;;  %v918_v59 = vmax.f32 %v902_v45, 0.0  ;;  %v6110_v62 = vpack.c.bf16 %v914_v49, %v910_v63  ;;  %v5250_v15 = vld [vmem:[#allocation5 + $0x254] ss:$8 sps:$4 sm:$0xff]   ;;  %v5248_v18 = vld [vmem:[#allocation5 + $0x250] ss:$8 sps:$4 sm:$0xff]  }
 0x2da   :  { %v904_v37 = vadd.f32 %v875_v42, %v866_v28  ;;  %v906_v39 = vadd.f32 %v883_v0, %v868_v29  ;;  %v867_v41 = vadd.f32 %v798_v33, %v6066_v10  ;;  %v869_v6 = vadd.f32 %v851_v34, %v619_v7  ;;  %v5235_v7 = vld [vmem:[%s6259_s4 + $0x8] sm:$0xff]   ;;  %v5253_v17 = vld [vmem:[#allocation5 + $0x354] ss:$8 sps:$4 sm:$0xff]   ;;  %v5272_v33 = vld [vmem:[#allocation5 + $0x210] ss:$8 sps:$4 sm:$0xff]  }
 0x2db   :  { %v917_v53 = vmax.f32 %v901_v31, 0.0  ;;  %v919_v55 = vmax.f32 %v903_v32, 0.0  ;;  %v911_v10 = vmax.f32 %v895_v44, 0.0  ;;  %v5247_v0 = vld [vmem:[#allocation5 + $0x364] ss:$8 sps:$4 sm:$0xff]  }
 0x2dc   :  { %v920_v48 = vmax.f32 %v904_v37, 0.0  ;;  %v905_v50 = vadd.f32 %v879_v46, %v867_v41  ;;  %v907_v8 = vadd.f32 %v887_v2, %v869_v6  ;;  %v922_v54 = vmax.f32 %v906_v39, 0.0  ;;  %v5256_v2 = vld [vmem:[#allocation5 + $0x244] ss:$8 sps:$4 sm:$0xff]   ;;  %v5257_v23 = vld [vmem:[#allocation5 + $0x340] ss:$8 sps:$4 sm:$0xff]  }
 0x2dd   :  { %v6104_v46 = vpack.c.bf16 %v915_v52, %v911_v10  ;;  %v5259_v20 = vld [vmem:[#allocation5 + $0x344] ss:$8 sps:$4 sm:$0xff]   ;;  %v5262_v24 = vld [vmem:[#allocation5 + $0x234] ss:$8 sps:$4 sm:$0xff]   ;;  %v5266_v29 = vld [vmem:[#allocation5 + $0x220] ss:$8 sps:$4 sm:$0xff]  }
 0x2de   :  { %v6094_v56 = vpack.c.bf16 %v920_v48, %v916_v47  ;;  %v921_v57 = vmax.f32 %v905_v50, 0.0  ;;  %v923_v42 = vmax.f32 %v907_v8, 0.0  ;;  %v6100_v61 = vpack.c.bf16 %v922_v54, %v918_v59  ;;  %v5265_v25 = vld [vmem:[#allocation5 + $0x334] ss:$8 sps:$4 sm:$0xff]   ;;  %v5268_v4 = vld [vmem:[#allocation5 + $0x224] ss:$8 sps:$4 sm:$0xff]  }
 0x2df   :  { %v5271_v28 = vld [vmem:[#allocation5 + $0x324] ss:$8 sps:$4 sm:$0xff]   ;;  %v5269_v30 = vld [vmem:[#allocation5 + $0x320] ss:$8 sps:$4 sm:$0xff]   ;;  %v5274_v31 = vld [vmem:[#allocation5 + $0x214] ss:$8 sps:$4 sm:$0xff]  }
 0x2e0   :  { %v6096_v60 = vpack.c.bf16 %v921_v57, %v917_v53  ;;  %v6098_v40 = vpack.c.bf16 %v923_v42, %v919_v55  ;;  %v5277_v32 = vld [vmem:[#allocation5 + $0x314] ss:$8 sps:$4 sm:$0xff]   ;;  %v5275_v34 = vld [vmem:[#allocation5 + $0x310] ss:$8 sps:$4 sm:$0xff]   ;;  %v5280_v37 = vld [vmem:[#allocation5 + $0x204] ss:$8 sps:$4 sm:$0xff]  }
 0x2e1   :  { %v5283_v39 = vld [vmem:[#allocation5 + $0x304] ss:$8 sps:$4 sm:$0xff]   ;;  %v5278_v41 = vld [vmem:[#allocation5 + $0x200] ss:$8 sps:$4 sm:$0xff]   ;;  %v5289_v44 = vld [vmem:[#allocation5 + $0x3f4] ss:$8 sps:$4 sm:$0xff]  }
 0x2e2   :  { %954 = vmatprep.subr.bf16.mxu1 %v6096_v60  ;;  %997 = vmatprep.subr.bf16.mxu0 %v6098_v40  ;;  %v5281_v6 = vld [vmem:[#allocation5 + $0x300] ss:$8 sps:$4 sm:$0xff]   ;;  %v5284_v45 = vld [vmem:[#allocation5 + $0x2f0] ss:$8 sps:$4 sm:$0xff]   ;;  %v5292_v48 = vld [vmem:[#allocation5 + $0x2e4] ss:$8 sps:$4 sm:$0xff]  }
 0x2e3   :  { %955 = vmatpush1.bf16.msra.mxu1 %v6094_v56  ;;  %998 = vmatpush1.bf16.msra.mxu0 %v6100_v61  ;;  %v5287_v47 = vld [vmem:[#allocation5 + $0x3f0] ss:$8 sps:$4 sm:$0xff]   ;;  %v5295_v50 = vld [vmem:[#allocation5 + $0x3e4] ss:$8 sps:$4 sm:$0xff]   ;;  %v5290_v8 = vld [vmem:[#allocation5 + $0x2e0] ss:$8 sps:$4 sm:$0xff]  }
 0x2e4   :  { %956 = vmatprep.subr.bf16.mxu1 %v6091_v35  ;;  %999 = vmatprep.subr.bf16.mxu0 %v6104_v46  ;;  %v5293_v51 = vld [vmem:[#allocation5 + $0x3e0] ss:$8 sps:$4 sm:$0xff]   ;;  %v5298_v52 = vld [vmem:[#allocation5 + $0x2d4] ss:$8 sps:$4 sm:$0xff]   ;;  %v5296_v54 = vld [vmem:[#allocation5 + $0x2d0] ss:$8 sps:$4 sm:$0xff]  }
 0x2e5   :  { %v5301_v53 = vld [vmem:[#allocation5 + $0x3d4] ss:$8 sps:$4 sm:$0xff]   ;;  %v5299_v55 = vld [vmem:[#allocation5 + $0x3d0] ss:$8 sps:$4 sm:$0xff]   ;;  %v5304_v57 = vld [vmem:[#allocation5 + $0x2c4] ss:$8 sps:$4 sm:$0xff]  }
 0x2e6   :  { %v5307_v42 = vld [vmem:[#allocation5 + $0x3c4] ss:$8 sps:$4 sm:$0xff]   ;;  %v5302_v58 = vld [vmem:[#allocation5 + $0x2c0] ss:$8 sps:$4 sm:$0xff]   ;;  %v5308_v10 = vld [vmem:[#allocation5 + $0x2b0] ss:$8 sps:$4 sm:$0xff]  }
 0x2e7   :  { %957 = vmatpush1.bf16.msra.mxu1 %v6087_v21  ;;  %1000 = vmatpush1.bf16.msra.mxu0 %v6110_v62  ;;  %v5305_v59 = vld [vmem:[#allocation5 + $0x3c0] ss:$8 sps:$4 sm:$0xff]   ;;  %v5310_v49 = vld [vmem:[#allocation5 + $0x2b4] ss:$8 sps:$4 sm:$0xff]   ;;  %v5311_v63 = vld [vmem:[#allocation5 + $0x3b0] ss:$8 sps:$4 sm:$0xff]  }
 0x2e8   :  { %1119 = vmatprep.subr.bf16.mxu1 %v6096_v60  ;;  %1162 = vmatprep.subr.bf16.mxu0 %v6098_v40 }
 0x2ea   :  { %4597 = vmatmul.mubr.msk.bf16.vlgmr.msra.gmra.mxu1 %vm356_vm1, %v5234_v1  ;;  %4598 = vmatmul.mubr.msk.bf16.vlgmr.msra.gmra.mxu0 %vm356_vm1, %v5234_v1  ;;  %v5313_v1 = vld [vmem:[#allocation5 + $0x3b4] ss:$8 sps:$4 sm:$0xff]  }
 0x2eb   :  { %1120 = vmatpush1.bf16.msra.mxu1 %v6094_v56  ;;  %1163 = vmatpush1.bf16.msra.mxu0 %v6100_v61 }
 0x2ec   :  { %1121 = vmatprep.subr.bf16.mxu1 %v6091_v35  ;;  %1164 = vmatprep.subr.bf16.mxu0 %v6104_v46 }
 0x2ed   :  { %1139 = vmatprep.mubr.bf16.mxu1 %v5876_v16  ;;  %1182 = vmatprep.mubr.bf16.mxu0 %v5876_v16 }
 0x2ef   :  { %1122 = vmatpush1.bf16.msra.mxu1 %v6087_v21  ;;  %1165 = vmatpush1.bf16.msra.mxu0 %v6110_v62 }
 0x2f0   :  { %1582 = vmatprep.subr.bf16.mxu1 %v5238_v3  ;;  %1625 = vmatprep.subr.bf16.mxu0 %v5241_v5  ;;  %v5316_v3 = vld [vmem:[#allocation5 + $0x2a4] ss:$8 sps:$4 sm:$0xff]  }
 0x2f1   :  { %v5319_v5 = vld [vmem:[#allocation5 + $0x3a4] ss:$8 sps:$4 sm:$0xff]  }
 0x2f2   :  { %4602 = vmatmul.mubr.msk.bf16.vlgmr.msra.gmra.mxu1 %vm356_vm1, %v5235_v7  ;;  %4603 = vmatmul.mubr.msk.bf16.vlgmr.msra.gmra.mxu0 %vm356_vm1, %v5235_v7  ;;  %v5314_v7 = vld [vmem:[#allocation5 + $0x2a0] ss:$8 sps:$4 sm:$0xff]  }
 0x2f3   :  { %1583 = vmatpush1.bf16.msra.mxu1 %v5236_v9  ;;  %1626 = vmatpush1.bf16.msra.mxu0 %v5239_v11  ;;  %v5317_v9 = vld [vmem:[#allocation5 + $0x3a0] ss:$8 sps:$4 sm:$0xff]   ;;  %v5320_v11 = vld [vmem:[#allocation5 + $0x290] ss:$8 sps:$4 sm:$0xff]  }
 0x2f4   :  { %1584 = vmatprep.subr.bf16.mxu1 %v5244_v12  ;;  %1627 = vmatprep.subr.bf16.mxu0 %v5247_v0  ;;  %v5322_v12 = vld [vmem:[#allocation5 + $0x294] ss:$8 sps:$4 sm:$0xff]   ;;  %v5323_v0 = vld [vmem:[#allocation5 + $0x390] ss:$8 sps:$4 sm:$0xff]  }
 0x2f7   :  { %1585 = vmatpush1.bf16.msra.mxu1 %v5242_v13  ;;  %1628 = vmatpush1.bf16.msra.mxu0 %v5245_v14  ;;  %v5325_v13 = vld [vmem:[#allocation5 + $0x394] ss:$8 sps:$4 sm:$0xff]   ;;  %v5328_v14 = vld [vmem:[#allocation5 + $0x284] ss:$8 sps:$4 sm:$0xff]  }
 0x2f8   :  { %1586 = vmatprep.subr.bf16.mxu1 %v5250_v15  ;;  %1629 = vmatprep.subr.bf16.mxu0 %v5253_v17  ;;  %v5331_v15 = vld [vmem:[#allocation5 + $0x384] ss:$8 sps:$4 sm:$0xff]   ;;  %v5326_v17 = vld [vmem:[#allocation5 + $0x280] ss:$8 sps:$4 sm:$0xff]  }
 0x2fb   :  { %1587 = vmatpush1.bf16.msra.mxu1 %v5248_v18  ;;  %1630 = vmatpush1.bf16.msra.mxu0 %v5251_v19  ;;  %v5329_v18 = vld [vmem:[#allocation5 + $0x380] ss:$8 sps:$4 sm:$0xff]   ;;  %v5334_v19 = vld [vmem:[#allocation5 + $0x74] ss:$8 sps:$4 sm:$0xff]  }
 0x2fc   :  { %1588 = vmatprep.subr.bf16.mxu1 %v5256_v2  ;;  %1631 = vmatprep.subr.bf16.mxu0 %v5259_v20  ;;  %v5337_v2 = vld [vmem:[#allocation5 + $0x174] ss:$8 sps:$4 sm:$0xff]  }
 0x2ff   :  { %1589 = vmatpush1.bf16.msra.mxu1 %v5254_v22  ;;  %1632 = vmatpush1.bf16.msra.mxu0 %v5257_v23 }
 0x300   :  { %1590 = vmatprep.subr.bf16.mxu1 %v5262_v24  ;;  %1633 = vmatprep.subr.bf16.mxu0 %v5265_v25 }
 0x303   :  { %1591 = vmatpush1.bf16.msra.mxu1 %v5260_v26  ;;  %1634 = vmatpush1.bf16.msra.mxu0 %v5263_v27 }
 0x304   :  { %1592 = vmatprep.subr.bf16.mxu1 %v5268_v4  ;;  %1635 = vmatprep.subr.bf16.mxu0 %v5271_v28 }
 0x307   :  { %1593 = vmatpush1.bf16.msra.mxu1 %v5266_v29  ;;  %1636 = vmatpush1.bf16.msra.mxu0 %v5269_v30 }
 0x308   :  { %1594 = vmatprep.subr.bf16.mxu1 %v5274_v31  ;;  %1637 = vmatprep.subr.bf16.mxu0 %v5277_v32 }
 0x30b   :  { %1595 = vmatpush1.bf16.msra.mxu1 %v5272_v33  ;;  %1638 = vmatpush1.bf16.msra.mxu0 %v5275_v34 }
 0x30c   :  { %1596 = vmatprep.subr.bf16.mxu1 %v5280_v37  ;;  %1639 = vmatprep.subr.bf16.mxu0 %v5283_v39 }
 0x30f   :  { %1597 = vmatpush1.bf16.msra.mxu1 %v5278_v41  ;;  %1640 = vmatpush1.bf16.msra.mxu0 %v5281_v6 }
 0x310   :  { %1598 = vmatprep.subr.bf16.mxu1 %v5286_v43  ;;  %1641 = vmatprep.subr.bf16.mxu0 %v5289_v44  ;;  %v5332_v44 = vld [vmem:[#allocation5 + $0x70] ss:$8 sps:$4 sm:$0xff]  }
 0x313   :  { %1599 = vmatpush2.bf16.msra.mxu1 %v5284_v45  ;;  %1642 = vmatpush2.bf16.msra.mxu0 %v5287_v47  ;;  %v5335_v45 = vld [vmem:[#allocation5 + $0x170] ss:$8 sps:$4 sm:$0xff]  }
 0x314   :  { %1600 = vmatprep.subr.bf16.mxu1 %v5292_v48  ;;  %1643 = vmatprep.subr.bf16.mxu0 %v5295_v50  ;;  %v5340_v50 = vld [vmem:[#allocation5 + $0x64] ss:$8 sps:$4 sm:$0xff]  }
 0x317   :  { %1601 = vmatpush2.bf16.msra.mxu1 %v5290_v8  ;;  %1644 = vmatpush2.bf16.msra.mxu0 %v5293_v51  ;;  %v5343_v8 = vld [vmem:[#allocation5 + $0x164] ss:$8 sps:$4 sm:$0xff]  }
 0x318   :  { %1602 = vmatprep.subr.bf16.mxu1 %v5298_v52  ;;  %1645 = vmatprep.subr.bf16.mxu0 %v5301_v53  ;;  %v5338_v53 = vld [vmem:[#allocation5 + $0x60] ss:$8 sps:$4 sm:$0xff]  }
 0x31b   :  { %1603 = vmatpush2.bf16.msra.mxu1 %v5296_v54  ;;  %1646 = vmatpush2.bf16.msra.mxu0 %v5299_v55  ;;  %v5341_v54 = vld [vmem:[#allocation5 + $0x160] ss:$8 sps:$4 sm:$0xff]   ;;  %v5346_v55 = vld [vmem:[#allocation5 + $0x54] ss:$8 sps:$4 sm:$0xff]  }
 0x31c   :  { %1604 = vmatprep.subr.bf16.mxu1 %v5304_v57  ;;  %1647 = vmatprep.subr.bf16.mxu0 %v5307_v42  ;;  %v5349_v57 = vld [vmem:[#allocation5 + $0x154] ss:$8 sps:$4 sm:$0xff]   ;;  %v5344_v42 = vld [vmem:[#allocation5 + $0x50] ss:$8 sps:$4 sm:$0xff]  }
 0x31f   :  { %1605 = vmatpush2.bf16.msra.mxu1 %v5302_v58  ;;  %1648 = vmatpush2.bf16.msra.mxu0 %v5305_v59  ;;  %v5347_v58 = vld [vmem:[#allocation5 + $0x150] ss:$8 sps:$4 sm:$0xff]   ;;  %v5352_v59 = vld [vmem:[#allocation5 + $0x44] ss:$8 sps:$4 sm:$0xff]  }
 0x320   :  { %1606 = vmatprep.subr.bf16.mxu1 %v5310_v49  ;;  %1649 = vmatprep.subr.bf16.mxu0 %v5313_v1  ;;  %v5350_v49 = vld [vmem:[#allocation5 + $0x40] ss:$8 sps:$4 sm:$0xff]   ;;  %v5358_v1 = vld [vmem:[#allocation5 + $0x34] ss:$8 sps:$4 sm:$0xff]  }
 0x323   :  { %1607 = vmatpush2.bf16.msra.mxu1 %v5308_v10  ;;  %1650 = vmatpush2.bf16.msra.mxu0 %v5311_v63  ;;  %v5355_v10 = vld [vmem:[#allocation5 + $0x144] ss:$8 sps:$4 sm:$0xff]   ;;  %v5353_v63 = vld [vmem:[#allocation5 + $0x140] ss:$8 sps:$4 sm:$0xff]  }
 0x324   :  { %1608 = vmatprep.subr.bf16.mxu1 %v5316_v3  ;;  %1651 = vmatprep.subr.bf16.mxu0 %v5319_v5  ;;  %v5361_v3 = vld [vmem:[#allocation5 + $0x134] ss:$8 sps:$4 sm:$0xff]   ;;  %v5356_v5 = vld [vmem:[#allocation5 + $0x30] ss:$8 sps:$4 sm:$0xff]  }
 0x327   :  { %1609 = vmatpush2.bf16.msra.mxu1 %v5314_v7  ;;  %1652 = vmatpush2.bf16.msra.mxu0 %v5317_v9  ;;  %v5359_v7 = vld [vmem:[#allocation5 + $0x130] ss:$8 sps:$4 sm:$0xff]   ;;  %v5364_v9 = vld [vmem:[#allocation5 + $0x24] ss:$8 sps:$4 sm:$0xff]  }
 0x328   :  { %1610 = vmatprep.subr.bf16.mxu1 %v5322_v12  ;;  %1653 = vmatprep.subr.bf16.mxu0 %v5325_v13  ;;  %v5362_v12 = vld [vmem:[#allocation5 + $0x20] ss:$8 sps:$4 sm:$0xff]   ;;  %v5370_v13 = vld [vmem:[#allocation5 + $0x14] ss:$8 sps:$4 sm:$0xff]  }
 0x32b   :  { %1611 = vmatpush2.bf16.msra.mxu1 %v5320_v11  ;;  %1654 = vmatpush2.bf16.msra.mxu0 %v5323_v0  ;;  %v5367_v11 = vld [vmem:[#allocation5 + $0x124] ss:$8 sps:$4 sm:$0xff]   ;;  %v5365_v0 = vld [vmem:[#allocation5 + $0x120] ss:$8 sps:$4 sm:$0xff]  }
 0x32c   :  { %1612 = vmatprep.subr.bf16.mxu1 %v5328_v14  ;;  %1655 = vmatprep.subr.bf16.mxu0 %v5331_v15  ;;  %v5373_v14 = vld [vmem:[#allocation5 + $0x114] ss:$8 sps:$4 sm:$0xff]   ;;  %v5368_v15 = vld [vmem:[#allocation5 + $0x10] ss:$8 sps:$4 sm:$0xff]  }
 0x32f   :  { %1613 = vmatpush2.bf16.msra.mxu1 %v5326_v17  ;;  %1656 = vmatpush2.bf16.msra.mxu0 %v5329_v18  ;;  %v5371_v17 = vld [vmem:[#allocation5 + $0x110] ss:$8 sps:$4 sm:$0xff]   ;;  %v5376_v18 = vld [vmem:[#allocation5 + $0x4] ss:$8 sps:$4 sm:$0xff]  }
 0x330   :  { %1988 = vmatprep.subr.bf16.mxu1 %v5334_v19  ;;  %2031 = vmatprep.subr.bf16.mxu0 %v5337_v2  ;;  %v5379_v19 = vld [vmem:[#allocation5 + $0x104] ss:$8 sps:$4 sm:$0xff]   ;;  %v5374_v2 = vld [vmem:[#allocation5] ss:$8 sps:$4 sm:$0xff]  }
 0x3aa   :  { %v6134_v20 = vpop.f32.mrf.mxu1  ;;  %v6136_v22 = vpop.f32.mrf.mxu0 }
 0x3ac   :  { %v978_v23 = vpop.f32.mrf.mxu1  ;;  %v1021_v24 = vpop.f32.mrf.mxu0 }
 0x3ae   :  { %v6138_v25 = vpop.f32.mrf.mxu1  ;;  %v6140_v26 = vpop.f32.mrf.mxu0 }
 0x3af   :  { %v1028_v27 = vpack.c.bf16 %v6138_v25, %v6134_v20  ;;  %v1030_v4 = vpack.c.bf16 %v6140_v26, %v6136_v22  ;;  %v5432_v20 = vld [vmem:[#allocation5 + $0x570] ss:$8 sps:$4 sm:$0xff]   ;;  %v5435_v22 = vld [vmem:[#allocation5 + $0x460] ss:$8 sps:$4 sm:$0xff]  }
 0x3b0   :  { %v982_v28 = vpop.f32.mrf.mxu1  ;;  %v1025_v29 = vpop.f32.mrf.mxu0  ;;  %v5438_v25 = vld [vmem:[#allocation5 + $0x560] ss:$8 sps:$4 sm:$0xff]   ;;  %v5441_v26 = vld [vmem:[#allocation5 + $0x450] ss:$8 sps:$4 sm:$0xff]  }
 0x3b1   :  { %v1029_v51 = vpack.c.bf16 %v982_v28, %v978_v23  ;;  %v1031_v52 = vpack.c.bf16 %v1025_v29, %v1021_v24  ;;  %v5377_v23 = vld [vmem:[#allocation5 + $0x100] ss:$8 sps:$4 sm:$0xff]   ;;  %v5382_v24 = vld [vmem:[#allocation5 + $0xf4] ss:$8 sps:$4 sm:$0xff]   ;;  %v5380_v29 = vld [vmem:[#allocation5 + $0xf0] ss:$8 sps:$4 sm:$0xff]  }
 0x3b2   :  { %v1141_v30 = vpop.f32.mrf.mxu1  ;;  %v1184_v31 = vpop.f32.mrf.mxu0  ;;  %v5385_v28 = vld [vmem:[#allocation5 + $0x1f4] ss:$8 sps:$4 sm:$0xff]  }
 0x3b4   :  { %v1143_v32 = vpop.f32.mrf.mxu1  ;;  %v1186_v33 = vpop.f32.mrf.mxu0 }
 0x3b6   :  { %v1145_v34 = vpop.f32.mrf.mxu1  ;;  %v1188_v37 = vpop.f32.mrf.mxu0 }
 0x3b7   :  { %v1193_v47 = vpack.c.bf16 %v1145_v34, %v1141_v30  ;;  %v1195_v48 = vpack.c.bf16 %v1188_v37, %v1184_v31  ;;  %v5383_v30 = vld [vmem:[#allocation5 + $0x1f0] ss:$8 sps:$4 sm:$0xff]   ;;  %v5388_v31 = vld [vmem:[#allocation5 + $0xe4] ss:$8 sps:$4 sm:$0xff]   ;;  %v5389_v34 = vld [vmem:[#allocation5 + $0x1e0] ss:$8 sps:$4 sm:$0xff]  }
 0x3b8   :  { %v1147_v39 = vpop.f32.mrf.mxu1  ;;  %v1190_v41 = vpop.f32.mrf.mxu0  ;;  %v5394_v37 = vld [vmem:[#allocation5 + $0xd4] ss:$8 sps:$4 sm:$0xff]  }
 0x3b9   :  { %v1194_v6 = vpack.c.bf16 %v1147_v39, %v1143_v32  ;;  %v1196_v43 = vpack.c.bf16 %v1190_v41, %v1186_v33  ;;  %v5391_v32 = vld [vmem:[#allocation5 + $0x1e4] ss:$8 sps:$4 sm:$0xff]   ;;  %v5386_v33 = vld [vmem:[#allocation5 + $0xe0] ss:$8 sps:$4 sm:$0xff]   ;;  %v5397_v39 = vld [vmem:[#allocation5 + $0x1d4] ss:$8 sps:$4 sm:$0xff]  }
 0x3ba   :  { %v5392_v41 = vld [vmem:[#allocation5 + $0xd0] ss:$8 sps:$4 sm:$0xff]  }
 0x3bb   :  { %1614 = vmatprep.mubr.bf16.mxu1 %v1194_v6  ;;  %1657 = vmatprep.mubr.bf16.mxu0 %v1196_v43  ;;  %v5395_v6 = vld [vmem:[#allocation5 + $0x1d0] ss:$8 sps:$4 sm:$0xff]   ;;  %v5400_v43 = vld [vmem:[#allocation5 + $0xc4] ss:$8 sps:$4 sm:$0xff]  }
 0x3bc   :  { %1615 = vmatmul.mubr.bf16.vlgmr.msra.gmra.mxu1 %v1193_v47  ;;  %1658 = vmatmul.mubr.bf16.vlgmr.msra.gmra.mxu0 %v1195_v48  ;;  %v5401_v47 = vld [vmem:[#allocation5 + $0x1c0] ss:$8 sps:$4 sm:$0xff]   ;;  %v5406_v48 = vld [vmem:[#allocation5 + $0xb4] ss:$8 sps:$4 sm:$0xff]  }
 0x3bd   :  { %1989 = vmatpush1.bf16.msra.mxu1 %v5332_v44  ;;  %2032 = vmatpush1.bf16.msra.mxu0 %v5335_v45  ;;  %v5403_v44 = vld [vmem:[#allocation5 + $0x1c4] ss:$8 sps:$4 sm:$0xff]   ;;  %v5398_v45 = vld [vmem:[#allocation5 + $0xc0] ss:$8 sps:$4 sm:$0xff]  }
 0x3be   :  { %2020 = vmatprep.mubr.bf16.mxu1 %v1029_v51  ;;  %2063 = vmatprep.mubr.bf16.mxu0 %v1031_v52  ;;  %v5407_v51 = vld [vmem:[#allocation5 + $0x1b0] ss:$8 sps:$4 sm:$0xff]   ;;  %v5412_v52 = vld [vmem:[#allocation5 + $0xa4] ss:$8 sps:$4 sm:$0xff]  }
 0x3bf   :  { %1990 = vmatprep.subr.bf16.mxu1 %v5340_v50  ;;  %2033 = vmatprep.subr.bf16.mxu0 %v5343_v8  ;;  %v5409_v50 = vld [vmem:[#allocation5 + $0x1b4] ss:$8 sps:$4 sm:$0xff]   ;;  %v5404_v8 = vld [vmem:[#allocation5 + $0xb0] ss:$8 sps:$4 sm:$0xff]  }
 0x3c1   :  { %1991 = vmatpush1.bf16.msra.mxu1 %v5338_v53  ;;  %2034 = vmatpush1.bf16.msra.mxu0 %v5341_v54  ;;  %v5415_v53 = vld [vmem:[#allocation5 + $0x1a4] ss:$8 sps:$4 sm:$0xff]   ;;  %v5410_v54 = vld [vmem:[#allocation5 + $0xa0] ss:$8 sps:$4 sm:$0xff]  }
 0x3c2   :  { %1992 = vmatprep.subr.bf16.mxu1 %v5346_v55  ;;  %2035 = vmatprep.subr.bf16.mxu0 %v5349_v57  ;;  %v5413_v55 = vld [vmem:[#allocation5 + $0x1a0] ss:$8 sps:$4 sm:$0xff]   ;;  %v5418_v57 = vld [vmem:[#allocation5 + $0x94] ss:$8 sps:$4 sm:$0xff]  }
 0x3c5   :  { %1993 = vmatpush1.bf16.msra.mxu1 %v5344_v42  ;;  %2036 = vmatpush1.bf16.msra.mxu0 %v5347_v58  ;;  %v5421_v42 = vld [vmem:[#allocation5 + $0x194] ss:$8 sps:$4 sm:$0xff]   ;;  %v5416_v58 = vld [vmem:[#allocation5 + $0x90] ss:$8 sps:$4 sm:$0xff]  }
 0x3c6   :  { %1994 = vmatprep.subr.bf16.mxu1 %v5352_v59  ;;  %2037 = vmatprep.subr.bf16.mxu0 %v5355_v10  ;;  %v5419_v59 = vld [vmem:[#allocation5 + $0x190] ss:$8 sps:$4 sm:$0xff]   ;;  %v5424_v10 = vld [vmem:[#allocation5 + $0x84] ss:$8 sps:$4 sm:$0xff]  }
 0x3c9   :  { %1995 = vmatpush1.bf16.msra.mxu1 %v5350_v49  ;;  %2038 = vmatpush1.bf16.msra.mxu0 %v5353_v63  ;;  %v5427_v49 = vld [vmem:[#allocation5 + $0x184] ss:$8 sps:$4 sm:$0xff]   ;;  %v5422_v63 = vld [vmem:[#allocation5 + $0x80] ss:$8 sps:$4 sm:$0xff]  }
 0x3ca   :  { %1996 = vmatprep.subr.bf16.mxu1 %v5358_v1  ;;  %2039 = vmatprep.subr.bf16.mxu0 %v5361_v3  ;;  %v5425_v1 = vld [vmem:[#allocation5 + $0x180] ss:$8 sps:$4 sm:$0xff]   ;;  %v5452_v3 = vld [vmem:[#allocation5 + $0x544] ss:$8 sps:$4 sm:$0xff]  }
 0x3cd   :  { %1997 = vmatpush1.bf16.msra.mxu1 %v5356_v5  ;;  %2040 = vmatpush1.bf16.msra.mxu0 %v5359_v7  ;;  %v5447_v5 = vld [vmem:[#allocation5 + $0x440] ss:$8 sps:$4 sm:$0xff]  }
 0x3ce   :  { %1998 = vmatprep.subr.bf16.mxu1 %v5364_v9  ;;  %2041 = vmatprep.subr.bf16.mxu0 %v5367_v11  ;;  %v5450_v7 = vld [vmem:[#allocation5 + $0x540] ss:$8 sps:$4 sm:$0xff]   ;;  %v5455_v9 = vld [vmem:[#allocation5 + $0x434] ss:$8 sps:$4 sm:$0xff]  }
 0x3cf   :  { %v5458_v11 = vld [vmem:[#allocation5 + $0x534] ss:$8 sps:$4 sm:$0xff]  }
 0x3d1   :  { %1999 = vmatpush1.bf16.msra.mxu1 %v5362_v12  ;;  %2042 = vmatpush1.bf16.msra.mxu0 %v5365_v0  ;;  %v5453_v12 = vld [vmem:[#allocation5 + $0x430] ss:$8 sps:$4 sm:$0xff]  }
 0x3d2   :  { %2000 = vmatprep.subr.bf16.mxu1 %v5370_v13  ;;  %2043 = vmatprep.subr.bf16.mxu0 %v5373_v14  ;;  %v5456_v0 = vld [vmem:[#allocation5 + $0x530] ss:$8 sps:$4 sm:$0xff]   ;;  %v5461_v13 = vld [vmem:[#allocation5 + $0x424] ss:$8 sps:$4 sm:$0xff]  }
 0x3d3   :  { %v5464_v14 = vld [vmem:[#allocation5 + $0x524] ss:$8 sps:$4 sm:$0xff]  }
 0x3d5   :  { %2001 = vmatpush1.bf16.msra.mxu1 %v5368_v15  ;;  %2044 = vmatpush1.bf16.msra.mxu0 %v5371_v17  ;;  %v5459_v15 = vld [vmem:[#allocation5 + $0x420] ss:$8 sps:$4 sm:$0xff]  }
 0x3d6   :  { %2002 = vmatprep.subr.bf16.mxu1 %v5376_v18  ;;  %2045 = vmatprep.subr.bf16.mxu0 %v5379_v19  ;;  %v5462_v17 = vld [vmem:[#allocation5 + $0x520] ss:$8 sps:$4 sm:$0xff]   ;;  %v5467_v18 = vld [vmem:[#allocation5 + $0x414] ss:$8 sps:$4 sm:$0xff]  }
 0x3d7   :  { %v5470_v19 = vld [vmem:[#allocation5 + $0x514] ss:$8 sps:$4 sm:$0xff]  }
 0x3d9   :  { %2003 = vmatpush1.bf16.msra.mxu1 %v5374_v2  ;;  %2046 = vmatpush1.bf16.msra.mxu0 %v5377_v23  ;;  %v5465_v2 = vld [vmem:[#allocation5 + $0x410] ss:$8 sps:$4 sm:$0xff]  }
 0x3da   :  { %2004 = vmatprep.subr.bf16.mxu1 %v5382_v24  ;;  %2047 = vmatprep.subr.bf16.mxu0 %v5385_v28  ;;  %v5468_v23 = vld [vmem:[#allocation5 + $0x510] ss:$8 sps:$4 sm:$0xff]   ;;  %v5473_v24 = vld [vmem:[#allocation5 + $0x404] ss:$8 sps:$4 sm:$0xff]  }
 0x3db   :  { %v5476_v28 = vld [vmem:[#allocation5 + $0x504] ss:$8 sps:$4 sm:$0xff]  }
 0x3dd   :  { %2005 = vmatpush2.bf16.msra.mxu1 %v5380_v29  ;;  %2048 = vmatpush2.bf16.msra.mxu0 %v5383_v30  ;;  %v5471_v29 = vld [vmem:[#allocation5 + $0x400] ss:$8 sps:$4 sm:$0xff]  }
 0x3de   :  { %2006 = vmatprep.subr.bf16.mxu1 %v5388_v31  ;;  %2049 = vmatprep.subr.bf16.mxu0 %v5391_v32  ;;  %v5474_v30 = vld [vmem:[#allocation5 + $0x500] ss:$8 sps:$4 sm:$0xff]   ;;  %v5479_v31 = vld [vmem:[#allocation5 + $0x4f4] ss:$8 sps:$4 sm:$0xff]  }
 0x3df   :  { %v5482_v32 = vld [vmem:[#allocation5 + $0x5f4] ss:$8 sps:$4 sm:$0xff]  }
 0x3e1   :  { %2007 = vmatpush2.bf16.msra.mxu1 %v5386_v33  ;;  %2050 = vmatpush2.bf16.msra.mxu0 %v5389_v34  ;;  %v5477_v33 = vld [vmem:[#allocation5 + $0x4f0] ss:$8 sps:$4 sm:$0xff]  }
 0x3e2   :  { %2008 = vmatprep.subr.bf16.mxu1 %v5394_v37  ;;  %2051 = vmatprep.subr.bf16.mxu0 %v5397_v39  ;;  %v5480_v34 = vld [vmem:[#allocation5 + $0x5f0] ss:$8 sps:$4 sm:$0xff]   ;;  %v5485_v37 = vld [vmem:[#allocation5 + $0x4e4] ss:$8 sps:$4 sm:$0xff]  }
 0x3e3   :  { %v5488_v39 = vld [vmem:[#allocation5 + $0x5e4] ss:$8 sps:$4 sm:$0xff]  }
 0x3e5   :  { %2009 = vmatpush2.bf16.msra.mxu1 %v5392_v41  ;;  %2052 = vmatpush2.bf16.msra.mxu0 %v5395_v6  ;;  %v5483_v41 = vld [vmem:[#allocation5 + $0x4e0] ss:$8 sps:$4 sm:$0xff]  }
 0x3e6   :  { %2010 = vmatprep.subr.bf16.mxu1 %v5400_v43  ;;  %2053 = vmatprep.subr.bf16.mxu0 %v5403_v44  ;;  %v5486_v6 = vld [vmem:[#allocation5 + $0x5e0] ss:$8 sps:$4 sm:$0xff]   ;;  %v5491_v43 = vld [vmem:[#allocation5 + $0x4d4] ss:$8 sps:$4 sm:$0xff]  }
 0x3e7   :  { %v5494_v44 = vld [vmem:[#allocation5 + $0x5d4] ss:$8 sps:$4 sm:$0xff]  }
 0x3e9   :  { %2011 = vmatpush2.bf16.msra.mxu1 %v5398_v45  ;;  %2054 = vmatpush2.bf16.msra.mxu0 %v5401_v47  ;;  %v5489_v45 = vld [vmem:[#allocation5 + $0x4d0] ss:$8 sps:$4 sm:$0xff]  }
 0x3ea   :  { %2012 = vmatprep.subr.bf16.mxu1 %v5406_v48  ;;  %2055 = vmatprep.subr.bf16.mxu0 %v5409_v50  ;;  %v5492_v47 = vld [vmem:[#allocation5 + $0x5d0] ss:$8 sps:$4 sm:$0xff]   ;;  %v5497_v48 = vld [vmem:[#allocation5 + $0x4c4] ss:$8 sps:$4 sm:$0xff]  }
 0x3eb   :  { %v5500_v50 = vld [vmem:[#allocation5 + $0x5c4] ss:$8 sps:$4 sm:$0xff]  }
 0x3ed   :  { %2013 = vmatpush2.bf16.msra.mxu1 %v5404_v8  ;;  %2056 = vmatpush2.bf16.msra.mxu0 %v5407_v51  ;;  %v5495_v8 = vld [vmem:[#allocation5 + $0x4c0] ss:$8 sps:$4 sm:$0xff]  }
 0x3ee   :  { %2014 = vmatprep.subr.bf16.mxu1 %v5412_v52  ;;  %2057 = vmatprep.subr.bf16.mxu0 %v5415_v53  ;;  %v5498_v51 = vld [vmem:[#allocation5 + $0x5c0] ss:$8 sps:$4 sm:$0xff]   ;;  %v5503_v52 = vld [vmem:[#allocation5 + $0x4b4] ss:$8 sps:$4 sm:$0xff]  }
 0x3ef   :  { %v5506_v53 = vld [vmem:[#allocation5 + $0x5b4] ss:$8 sps:$4 sm:$0xff]  }
 0x3f1   :  { %2015 = vmatpush2.bf16.msra.mxu1 %v5410_v54  ;;  %2058 = vmatpush2.bf16.msra.mxu0 %v5413_v55  ;;  %v5501_v54 = vld [vmem:[#allocation5 + $0x4b0] ss:$8 sps:$4 sm:$0xff]  }
 0x3f2   :  { %2016 = vmatprep.subr.bf16.mxu1 %v5418_v57  ;;  %2059 = vmatprep.subr.bf16.mxu0 %v5421_v42  ;;  %v5504_v55 = vld [vmem:[#allocation5 + $0x5b0] ss:$8 sps:$4 sm:$0xff]   ;;  %v5509_v57 = vld [vmem:[#allocation5 + $0x4a4] ss:$8 sps:$4 sm:$0xff]  }
 0x3f3   :  { %v5512_v42 = vld [vmem:[#allocation5 + $0x5a4] ss:$8 sps:$4 sm:$0xff]  }
 0x3f5   :  { %2017 = vmatpush2.bf16.msra.mxu1 %v5416_v58  ;;  %2060 = vmatpush2.bf16.msra.mxu0 %v5419_v59  ;;  %v5507_v58 = vld [vmem:[#allocation5 + $0x4a0] ss:$8 sps:$4 sm:$0xff]  }
 0x3f6   :  { %2018 = vmatprep.subr.bf16.mxu1 %v5424_v10  ;;  %2061 = vmatprep.subr.bf16.mxu0 %v5427_v49  ;;  %v5510_v59 = vld [vmem:[#allocation5 + $0x5a0] ss:$8 sps:$4 sm:$0xff]   ;;  %v5515_v10 = vld [vmem:[#allocation5 + $0x494] ss:$8 sps:$4 sm:$0xff]  }
 0x3f7   :  { %v5518_v49 = vld [vmem:[#allocation5 + $0x594] ss:$8 sps:$4 sm:$0xff]  }
 0x3f9   :  { %2019 = vmatpush2.bf16.msra.mxu1 %v5422_v63  ;;  %2062 = vmatpush2.bf16.msra.mxu0 %v5425_v1  ;;  %v5513_v63 = vld [vmem:[#allocation5 + $0x490] ss:$8 sps:$4 sm:$0xff]  }
 0x3fa   :  { %2097 = vmatprep.subr.bf16.mxu1 %v6096_v60  ;;  %2140 = vmatprep.subr.bf16.mxu0 %v6098_v40  ;;  %v5428_v60 = vld [vmem:[%s6259_s4 + $0x10] sm:$0xff]  }
 0x3fb   :  { %v5429_v40 = vld [vmem:[#allocation5 + $0x470] ss:$8 sps:$4 sm:$0xff]  }
 0x3fc   :  { %2021 = vmatmul.mubr.bf16.vlgmr.msra.gmra.mxu1 %v1028_v27  ;;  %2064 = vmatmul.mubr.bf16.vlgmr.msra.gmra.mxu0 %v1030_v4  ;;  %v5444_v27 = vld [vmem:[#allocation5 + $0x550] ss:$8 sps:$4 sm:$0xff]   ;;  %v5449_v4 = vld [vmem:[#allocation5 + $0x444] ss:$8 sps:$4 sm:$0xff]  }
 0x3fd   :  { %2098 = vmatpush1.bf16.msra.mxu1 %v6094_v56  ;;  %2141 = vmatpush1.bf16.msra.mxu0 %v6100_v61  ;;  %v5431_v56 = vld [vmem:[#allocation5 + $0x474] ss:$8 sps:$4 sm:$0xff]   ;;  %v5437_v61 = vld [vmem:[#allocation5 + $0x464] ss:$8 sps:$4 sm:$0xff]   ;;  %v5516_v1 = vld [vmem:[#allocation5 + $0x590] ss:$8 sps:$4 sm:$0xff]  }
 0x3fe   :  { %2099 = vmatprep.subr.bf16.mxu1 %v6091_v35  ;;  %2142 = vmatprep.subr.bf16.mxu0 %v6104_v46  ;;  %v5434_v35 = vld [vmem:[#allocation5 + $0x574] ss:$8 sps:$4 sm:$0xff]   ;;  %v5440_v46 = vld [vmem:[#allocation5 + $0x564] ss:$8 sps:$4 sm:$0xff]  }
 0x3ff   :  { %2117 = vmatprep.mubr.bf16.mxu1 %v5876_v16  ;;  %2160 = vmatprep.mubr.bf16.mxu0 %v5876_v16 }
 0x401   :  { %2100 = vmatpush1.bf16.msra.mxu1 %v6087_v21  ;;  %2143 = vmatpush1.bf16.msra.mxu0 %v6110_v62  ;;  %v5443_v21 = vld [vmem:[#allocation5 + $0x454] ss:$8 sps:$4 sm:$0xff]  }
 0x402   :  { %2560 = vmatprep.subr.bf16.mxu1 %v5431_v56  ;;  %2603 = vmatprep.subr.bf16.mxu0 %v5434_v35  ;;  %v5446_v62 = vld [vmem:[#allocation5 + $0x554] ss:$8 sps:$4 sm:$0xff]   ;;  %v5519_v56 = vld [vmem:[#allocation5 + $0x480] ss:$8 sps:$4 sm:$0xff]  }
 0x404   :  { %4735 = vmatmul.mubr.msk.bf16.vlgmr.msra.gmra.mxu1 %vm356_vm1, %v5428_v60  ;;  %4736 = vmatmul.mubr.msk.bf16.vlgmr.msra.gmra.mxu0 %vm356_vm1, %v5428_v60  ;;  %v5521_v60 = vld [vmem:[#allocation5 + $0x484] ss:$8 sps:$4 sm:$0xff]  }
 0x405   :  { %2561 = vmatpush1.bf16.msra.mxu1 %v5429_v40  ;;  %2604 = vmatpush1.bf16.msra.mxu0 %v5432_v20  ;;  %v5524_v40 = vld [vmem:[#allocation5 + $0x584] ss:$8 sps:$4 sm:$0xff]   ;;  %v5522_v20 = vld [vmem:[#allocation5 + $0x580] ss:$8 sps:$4 sm:$0xff]  }
 0x406   :  { %2562 = vmatprep.subr.bf16.mxu1 %v5437_v61  ;;  %2605 = vmatprep.subr.bf16.mxu0 %v5440_v46 }
 0x409   :  { %2563 = vmatpush1.bf16.msra.mxu1 %v5435_v22  ;;  %2606 = vmatpush1.bf16.msra.mxu0 %v5438_v25 }
 0x40a   :  { %2564 = vmatprep.subr.bf16.mxu1 %v5443_v21  ;;  %2607 = vmatprep.subr.bf16.mxu0 %v5446_v62 }
 0x40d   :  { %2565 = vmatpush1.bf16.msra.mxu1 %v5441_v26  ;;  %2608 = vmatpush1.bf16.msra.mxu0 %v5444_v27 }
 0x40e   :  { %2566 = vmatprep.subr.bf16.mxu1 %v5449_v4  ;;  %2609 = vmatprep.subr.bf16.mxu0 %v5452_v3 }
 0x411   :  { %2567 = vmatpush1.bf16.msra.mxu1 %v5447_v5  ;;  %2610 = vmatpush1.bf16.msra.mxu0 %v5450_v7 }
 0x412   :  { %2568 = vmatprep.subr.bf16.mxu1 %v5455_v9  ;;  %2611 = vmatprep.subr.bf16.mxu0 %v5458_v11 }
 0x415   :  { %2569 = vmatpush1.bf16.msra.mxu1 %v5453_v12  ;;  %2612 = vmatpush1.bf16.msra.mxu0 %v5456_v0 }
 0x416   :  { %2570 = vmatprep.subr.bf16.mxu1 %v5461_v13  ;;  %2613 = vmatprep.subr.bf16.mxu0 %v5464_v14 }
 0x419   :  { %2571 = vmatpush1.bf16.msra.mxu1 %v5459_v15  ;;  %2614 = vmatpush1.bf16.msra.mxu0 %v5462_v17 }
 0x41a   :  { %2572 = vmatprep.subr.bf16.mxu1 %v5467_v18  ;;  %2615 = vmatprep.subr.bf16.mxu0 %v5470_v19 }
 0x41d   :  { %2573 = vmatpush1.bf16.msra.mxu1 %v5465_v2  ;;  %2616 = vmatpush1.bf16.msra.mxu0 %v5468_v23 }
 0x41e   :  { %2574 = vmatprep.subr.bf16.mxu1 %v5473_v24  ;;  %2617 = vmatprep.subr.bf16.mxu0 %v5476_v28 }
 0x421   :  { %2575 = vmatpush1.bf16.msra.mxu1 %v5471_v29  ;;  %2618 = vmatpush1.bf16.msra.mxu0 %v5474_v30 }
 0x422   :  { %2576 = vmatprep.subr.bf16.mxu1 %v5479_v31  ;;  %2619 = vmatprep.subr.bf16.mxu0 %v5482_v32 }
 0x425   :  { %2577 = vmatpush2.bf16.msra.mxu1 %v5477_v33  ;;  %2620 = vmatpush2.bf16.msra.mxu0 %v5480_v34 }
 0x426   :  { %2578 = vmatprep.subr.bf16.mxu1 %v5485_v37  ;;  %2621 = vmatprep.subr.bf16.mxu0 %v5488_v39 }
 0x429   :  { %2579 = vmatpush2.bf16.msra.mxu1 %v5483_v41  ;;  %2622 = vmatpush2.bf16.msra.mxu0 %v5486_v6 }
 0x42a   :  { %2580 = vmatprep.subr.bf16.mxu1 %v5491_v43  ;;  %2623 = vmatprep.subr.bf16.mxu0 %v5494_v44 }
 0x42d   :  { %2581 = vmatpush2.bf16.msra.mxu1 %v5489_v45  ;;  %2624 = vmatpush2.bf16.msra.mxu0 %v5492_v47 }
 0x42e   :  { %2582 = vmatprep.subr.bf16.mxu1 %v5497_v48  ;;  %2625 = vmatprep.subr.bf16.mxu0 %v5500_v50  ;;  %v2650_v50 = vld [vmem:[%s6261_s6] sm:$0x3] }
 0x431   :  { %2583 = vmatpush2.bf16.msra.mxu1 %v5495_v8  ;;  %2626 = vmatpush2.bf16.msra.mxu0 %v5498_v51 }
 0x432   :  { %2584 = vmatprep.subr.bf16.mxu1 %v5503_v52  ;;  %2627 = vmatprep.subr.bf16.mxu0 %v5506_v53 }
 0x435   :  { %2585 = vmatpush2.bf16.msra.mxu1 %v5501_v54  ;;  %2628 = vmatpush2.bf16.msra.mxu0 %v5504_v55  ;;  %v2655_v54 = vrot.slane %v2650_v50, %v6076_v36 }
 0x436   :  { %2586 = vmatprep.subr.bf16.mxu1 %v5509_v57  ;;  %2629 = vmatprep.subr.bf16.mxu0 %v5512_v42 }
 0x439   :  { %2587 = vmatpush2.bf16.msra.mxu1 %v5507_v58  ;;  %2630 = vmatpush2.bf16.msra.mxu0 %v5510_v59  ;;  %v2659_v59 = vrot.slane %v2650_v50, %v6081_v38  ;;  %v5551_v50 = vld [vmem:[#allocation7 + $0x1f4] ss:$8 sps:$4 sm:$0xff]  }
 0x43a   :  { %2588 = vmatprep.subr.bf16.mxu1 %v5515_v10  ;;  %2631 = vmatprep.subr.bf16.mxu0 %v5518_v49 }
 0x43d   :  { %2589 = vmatpush2.bf16.msra.mxu1 %v5513_v63  ;;  %2632 = vmatpush2.bf16.msra.mxu0 %v5516_v1 }
 0x43e   :  { %2590 = vmatprep.subr.bf16.mxu1 %v5521_v60  ;;  %2633 = vmatprep.subr.bf16.mxu0 %v5524_v40 }
 0x441   :  { %2591 = vmatpush2.bf16.msra.mxu1 %v5519_v56  ;;  %2634 = vmatpush2.bf16.msra.mxu0 %v5522_v20 }
 0x47c   :  { %v1616_v35 = vpop.f32.mrf.mxu1  ;;  %v1659_v61 = vpop.f32.mrf.mxu0 }
 0x47d   :  { %v1660_v46 = vadd.f32 %v1659_v61, %v1616_v35 }
 0x47e   :  { %v1618_v22 = vpop.f32.mrf.mxu1  ;;  %v1661_v25 = vpop.f32.mrf.mxu0 }
 0x47f   :  { %v1662_v21 = vadd.f32 %v1661_v25, %v1618_v22 }
 0x480   :  { %v1620_v62 = vpop.f32.mrf.mxu1  ;;  %v1663_v26 = vpop.f32.mrf.mxu0 }
 0x481   :  { %v1664_v27 = vadd.f32 %v1663_v26, %v1620_v62 }
 0x482   :  { %v1622_v4 = vpop.f32.mrf.mxu1  ;;  %v1665_v3 = vpop.f32.mrf.mxu0 }
 0x483   :  { %v1666_v5 = vadd.f32 %v1665_v3, %v1622_v4  ;;  %v5575_v4 = vld [vmem:[#allocation7 + $0x74] ss:$8 sps:$4 sm:$0xff]   ;;  %v2672_v3 = vld [vmem:[%s6262_s7] sm:$0xf] }
 0x4bc   :  { %v2022_v7 = vpop.f32.mrf.mxu1  ;;  %v2065_v9 = vpop.f32.mrf.mxu0 }
 0x4bd   :  { %v2023_v11 = vadd.f32 %v2022_v7, %v1660_v46  ;;  %v5525_v7 = vld [vmem:[#allocation7 + $0x170] ss:$8 sps:$4 sm:$0xff]  }
 0x4be   :  { %v2024_v12 = vpop.f32.mrf.mxu1  ;;  %v2067_v0 = vpop.f32.mrf.mxu0 }
 0x4bf   :  { %v2066_v13 = vadd.f32 %v2065_v9, %v2023_v11  ;;  %v2025_v14 = vadd.f32 %v2024_v12, %v1662_v21  ;;  %v5573_v9 = vld [vmem:[#allocation7 + $0x70] ss:$8 sps:$4 sm:$0xff]   ;;  %v5530_v11 = vld [vmem:[#allocation7 + $0x164] ss:$8 sps:$4 sm:$0xff]  }
 0x4c0   :  { %v2026_v15 = vpop.f32.mrf.mxu1  ;;  %v2069_v17 = vpop.f32.mrf.mxu0  ;;  %v5578_v12 = vld [vmem:[#allocation7 + $0x64] ss:$8 sps:$4 sm:$0xff]  }
 0x4c1   :  { %v2068_v18 = vadd.f32 %v2067_v0, %v2025_v14  ;;  %v2027_v19 = vadd.f32 %v2026_v15, %v1664_v27  ;;  %v5527_v27 = vld [vmem:[#allocation7 + $0x174] ss:$8 sps:$4 sm:$0xff]   ;;  %v5528_v0 = vld [vmem:[#allocation7 + $0x160] ss:$8 sps:$4 sm:$0xff]  }
 0x4c2   :  { %v2028_v2 = vpop.f32.mrf.mxu1  ;;  %v2071_v23 = vpop.f32.mrf.mxu0  ;;  %v5533_v14 = vld [vmem:[#allocation7 + $0x154] ss:$8 sps:$4 sm:$0xff]  }
 0x4c3   :  { %v2070_v24 = vadd.f32 %v2069_v17, %v2027_v19  ;;  %v2029_v28 = vadd.f32 %v2028_v2, %v1666_v5  ;;  %v4802_v5 = vld [vmem:[%s6262_s7 + $0x4] sm:$0xf]  ;;  %v5581_v15 = vld [vmem:[#allocation7 + $0x54] ss:$8 sps:$4 sm:$0xff]   ;;  %v5531_v17 = vld [vmem:[#allocation7 + $0x150] ss:$8 sps:$4 sm:$0xff]  }
 0x4c4   :  { %v2119_v29 = vpop.f32.mrf.mxu1  ;;  %v2162_v30 = vpop.f32.mrf.mxu0  ;;  %v5536_v19 = vld [vmem:[#allocation7 + $0x144] ss:$8 sps:$4 sm:$0xff]  }
 0x4c5   :  { %v2072_v31 = vadd.f32 %v2071_v23, %v2029_v28  ;;  %v5584_v2 = vld [vmem:[#allocation7 + $0x44] ss:$8 sps:$4 sm:$0xff]   ;;  %v5534_v23 = vld [vmem:[#allocation7 + $0x140] ss:$8 sps:$4 sm:$0xff]   ;;  %v5539_v28 = vld [vmem:[#allocation7 + $0x134] ss:$8 sps:$4 sm:$0xff]  }
 0x4c6   :  { %v2121_v32 = vpop.f32.mrf.mxu1  ;;  %v2164_v33 = vpop.f32.mrf.mxu0 }
 0x4c8   :  { %v2123_v34 = vpop.f32.mrf.mxu1  ;;  %v2166_v37 = vpop.f32.mrf.mxu0 }
 0x4c9   :  { %v2171_v44 = vpack.c.bf16 %v2123_v34, %v2119_v29  ;;  %v2173_v45 = vpack.c.bf16 %v2166_v37, %v2162_v30  ;;  %v5587_v29 = vld [vmem:[#allocation7 + $0x34] ss:$8 sps:$4 sm:$0xff]   ;;  %v5537_v30 = vld [vmem:[#allocation7 + $0x130] ss:$8 sps:$4 sm:$0xff]   ;;  %v5540_v34 = vld [vmem:[#allocation7 + $0x120] ss:$8 sps:$4 sm:$0xff]  }
 0x4ca   :  { %v2125_v39 = vpop.f32.mrf.mxu1  ;;  %v2168_v41 = vpop.f32.mrf.mxu0  ;;  %v5588_v37 = vld [vmem:[#allocation7 + $0x20] ss:$8 sps:$4 sm:$0xff]  }
 0x4cb   :  { %v2172_v6 = vpack.c.bf16 %v2125_v39, %v2121_v32  ;;  %v2174_v43 = vpack.c.bf16 %v2168_v41, %v2164_v33  ;;  %v5542_v32 = vld [vmem:[#allocation7 + $0x124] ss:$8 sps:$4 sm:$0xff]   ;;  %v5545_v39 = vld [vmem:[#allocation7 + $0x114] ss:$8 sps:$4 sm:$0xff]  }
 0x4cc   :  { %v5590_v33 = vld [vmem:[#allocation7 + $0x24] ss:$8 sps:$4 sm:$0xff]   ;;  %v5593_v41 = vld [vmem:[#allocation7 + $0x14] ss:$8 sps:$4 sm:$0xff]  }
 0x4cd   :  { %2592 = vmatprep.mubr.bf16.mxu1 %v2172_v6  ;;  %2635 = vmatprep.mubr.bf16.mxu0 %v2174_v43  ;;  %v5543_v6 = vld [vmem:[#allocation7 + $0x110] ss:$8 sps:$4 sm:$0xff]  }
 0x4ce   :  { %2593 = vmatmul.mubr.bf16.vlgmr.msra.gmra.mxu1 %v2171_v44  ;;  %2636 = vmatmul.mubr.bf16.vlgmr.msra.gmra.mxu0 %v2173_v45  ;;  %v5591_v43 = vld [vmem:[#allocation7 + $0x10] ss:$8 sps:$4 sm:$0xff]   ;;  %v5548_v44 = vld [vmem:[#allocation7 + $0x104] ss:$8 sps:$4 sm:$0xff]  }
 0x4cf   :  { %2709 = vmatprep.mubr.bf16.mxu1 %v5876_v16  ;;  %2789 = vmatprep.mubr.bf16.mxu0 %v5876_v16  ;;  %v5596_v45 = vld [vmem:[#allocation7 + $0x4] ss:$8 sps:$4 sm:$0xff]  }
 0x58e   :  { %v2594_v47 = vpop.f32.mrf.mxu1  ;;  %v2637_v48 = vpop.f32.mrf.mxu0 }
 0x58f   :  { %v2638_v8 = vadd.f32 %v2637_v48, %v2594_v47  ;;  %v5546_v47 = vld [vmem:[#allocation7 + $0x100] ss:$8 sps:$4 sm:$0xff]  }
 0x590   :  { %v2596_v51 = vpop.f32.mrf.mxu1  ;;  %v2639_v52 = vpop.f32.mrf.mxu0  ;;  %v5594_v48 = vld [vmem:[#allocation7] ss:$8 sps:$4 sm:$0xff]  }
 0x591   :  { %v2646_v53 = vadd.f32 %v2638_v8, %v2066_v13  ;;  %v2640_v55 = vadd.f32 %v2639_v52, %v2596_v51  ;;  %v5576_v13 = vld [vmem:[#allocation7 + $0x60] ss:$8 sps:$4 sm:$0xff]   ;;  %v5599_v8 = vld [vmem:[#allocation7 + $0xf4] ss:$8 sps:$4 sm:$0xff]   ;;  %v5549_v51 = vld [vmem:[#allocation7 + $0x1f0] ss:$8 sps:$4 sm:$0xff]  }
 0x592   :  { %v2598_v57 = vpop.f32.mrf.mxu1  ;;  %v2641_v42 = vpop.f32.mrf.mxu0  ;;  %v5597_v52 = vld [vmem:[#allocation7 + $0xf0] ss:$8 sps:$4 sm:$0xff]  }
 0x593   :  { %v2647_v58 = vadd.f32 %v2640_v55, %v2068_v18  ;;  %v2642_v10 = vadd.f32 %v2641_v42, %v2598_v57  ;;  %v2662_v1 = vadd.f32 %v2655_v54, %v2646_v53  ;;  %v5579_v18 = vld [vmem:[#allocation7 + $0x50] ss:$8 sps:$4 sm:$0xff]   ;;  %v5554_v53 = vld [vmem:[#allocation7 + $0x1e4] ss:$8 sps:$4 sm:$0xff]   ;;  %v5552_v55 = vld [vmem:[#allocation7 + $0x1e0] ss:$8 sps:$4 sm:$0xff]  }
 0x594   :  { %v2600_v49 = vpop.f32.mrf.mxu1  ;;  %v2643_v63 = vpop.f32.mrf.mxu0  ;;  %v5600_v57 = vld [vmem:[#allocation7 + $0xe0] ss:$8 sps:$4 sm:$0xff]   ;;  %v5557_v42 = vld [vmem:[#allocation7 + $0x1d4] ss:$8 sps:$4 sm:$0xff]  }
 0x595   :  { %v2648_v60 = vadd.f32 %v2642_v10, %v2070_v24  ;;  %v2644_v40 = vadd.f32 %v2643_v63, %v2600_v49  ;;  %v2663_v56 = vadd.f32 %v2659_v59, %v2647_v58  ;;  %v2666_v61 = vmax.f32 %v2662_v1, 0.0  ;;  %v5582_v24 = vld [vmem:[#allocation7 + $0x40] ss:$8 sps:$4 sm:$0xff]   ;;  %v5605_v58 = vld [vmem:[#allocation7 + $0xd4] ss:$8 sps:$4 sm:$0xff]  }
 0x596   :  { %v5603_v10 = vld [vmem:[#allocation7 + $0xd0] ss:$8 sps:$4 sm:$0xff]   ;;  %v5560_v49 = vld [vmem:[#allocation7 + $0x1c4] ss:$8 sps:$4 sm:$0xff]   ;;  %v5558_v1 = vld [vmem:[#allocation7 + $0x1c0] ss:$8 sps:$4 sm:$0xff]  }
 0x597   :  { %v2664_v20 = vadd.f32 %v2655_v54, %v2648_v60  ;;  %v2649_v35 = vadd.f32 %v2644_v40, %v2072_v31  ;;  %v2667_v25 = vmax.f32 %v2663_v56, 0.0  ;;  %v5585_v31 = vld [vmem:[#allocation7 + $0x30] ss:$8 sps:$4 sm:$0xff]   ;;  %v5602_v54 = vld [vmem:[#allocation7 + $0xe4] ss:$8 sps:$4 sm:$0xff]  }
 0x598   :  { %v5608_v63 = vld [vmem:[#allocation7 + $0xc4] ss:$8 sps:$4 sm:$0xff]   ;;  %v5606_v60 = vld [vmem:[#allocation7 + $0xc0] ss:$8 sps:$4 sm:$0xff]   ;;  %v5563_v40 = vld [vmem:[#allocation7 + $0x1b4] ss:$8 sps:$4 sm:$0xff]  }
 0x599   :  { %v2668_v46 = vmax.f32 %v2664_v20, 0.0  ;;  %v2665_v22 = vadd.f32 %v2659_v59, %v2649_v35  ;;  %v5555_v59 = vld [vmem:[#allocation7 + $0x1d0] ss:$8 sps:$4 sm:$0xff]   ;;  %v5611_v56 = vld [vmem:[#allocation7 + $0xb4] ss:$8 sps:$4 sm:$0xff]  }
 0x59a   :  { %v5561_v20 = vld [vmem:[#allocation7 + $0x1b0] ss:$8 sps:$4 sm:$0xff]  }
 0x59b   :  { %v6174_v21 = vpack.c.bf16 %v2668_v46, %v2666_v61  ;;  %v2669_v62 = vmax.f32 %v2665_v22, 0.0  ;;  %v5609_v35 = vld [vmem:[#allocation7 + $0xb0] ss:$8 sps:$4 sm:$0xff]   ;;  %v5566_v61 = vld [vmem:[#allocation7 + $0x1a4] ss:$8 sps:$4 sm:$0xff]  }
 0x59c   :  { %v5614_v46 = vld [vmem:[#allocation7 + $0xa4] ss:$8 sps:$4 sm:$0xff]   ;;  %v5564_v22 = vld [vmem:[#allocation7 + $0x1a0] ss:$8 sps:$4 sm:$0xff]  }
 0x59d   :  { %v6176_v26 = vpack.c.bf16 %v2669_v62, %v2667_v25  ;;  %v5612_v25 = vld [vmem:[#allocation7 + $0xa0] ss:$8 sps:$4 sm:$0xff]   ;;  %v5569_v62 = vld [vmem:[#allocation7 + $0x194] ss:$8 sps:$4 sm:$0xff]  }
 0x59f   :  { %2691 = vmatprep.subr.bf16.mxu1 %v6176_v26  ;;  %2771 = vmatprep.subr.bf16.mxu0 %v6176_v26 }
 0x5a0   :  { %2692 = vmatpush1.bf16.msra.mxu1 %v6174_v21  ;;  %2772 = vmatpush1.bf16.msra.mxu0 %v6174_v21 }
 0x5a1   :  { %2993 = vmatprep.subr.bf16.mxu1 %v5527_v27  ;;  %3194 = vmatprep.subr.bf16.mxu0 %v5575_v4  ;;  %v5617_v27 = vld [vmem:[#allocation7 + $0x94] ss:$8 sps:$4 sm:$0xff]   ;;  %v5567_v4 = vld [vmem:[#allocation7 + $0x190] ss:$8 sps:$4 sm:$0xff]  }
 0x5a3   :  { %4801 = vmatmul.mubr.msk.bf16.vlgmr.msra.gmra.mxu1 %vm2673_vm2, %v2672_v3  ;;  %4803 = vmatmul.mubr.msk.bf16.vlgmr.msra.gmra.mxu0 %vm2673_vm2, %v4802_v5  ;;  %v5615_v3 = vld [vmem:[#allocation7 + $0x90] ss:$8 sps:$4 sm:$0xff]   ;;  %v5572_v5 = vld [vmem:[#allocation7 + $0x184] ss:$8 sps:$4 sm:$0xff]  }
 0x5a4   :  { %2994 = vmatpush1.bf16.msra.mxu1 %v5525_v7  ;;  %3195 = vmatpush1.bf16.msra.mxu0 %v5573_v9  ;;  %v5570_v7 = vld [vmem:[#allocation7 + $0x180] ss:$8 sps:$4 sm:$0xff]   ;;  %v5620_v9 = vld [vmem:[#allocation7 + $0x84] ss:$8 sps:$4 sm:$0xff]  }
 0x5a5   :  { %2995 = vmatprep.subr.bf16.mxu1 %v5530_v11  ;;  %3196 = vmatprep.subr.bf16.mxu0 %v5578_v12  ;;  %v5618_v11 = vld [vmem:[#allocation7 + $0x80] ss:$8 sps:$4 sm:$0xff]   ;;  %v5623_v12 = vld [vmem:[#allocation7 + $0x274] ss:$8 sps:$4 sm:$0xff]  }
 0x5a8   :  { %2996 = vmatpush1.bf16.msra.mxu1 %v5528_v0  ;;  %3197 = vmatpush1.bf16.msra.mxu0 %v5576_v13 }
 0x5a9   :  { %2997 = vmatprep.subr.bf16.mxu1 %v5533_v14  ;;  %3198 = vmatprep.subr.bf16.mxu0 %v5581_v15 }
 0x5ac   :  { %2998 = vmatpush1.bf16.msra.mxu1 %v5531_v17  ;;  %3199 = vmatpush1.bf16.msra.mxu0 %v5579_v18 }
 0x5ad   :  { %2999 = vmatprep.subr.bf16.mxu1 %v5536_v19  ;;  %3200 = vmatprep.subr.bf16.mxu0 %v5584_v2 }
 0x5b0   :  { %3000 = vmatpush1.bf16.msra.mxu1 %v5534_v23  ;;  %3201 = vmatpush1.bf16.msra.mxu0 %v5582_v24 }
 0x5b1   :  { %3001 = vmatprep.subr.bf16.mxu1 %v5539_v28  ;;  %3202 = vmatprep.subr.bf16.mxu0 %v5587_v29  ;;  %v5621_v28 = vld [vmem:[#allocation7 + $0x270] ss:$8 sps:$4 sm:$0xff]  }
 0x5b4   :  { %3002 = vmatpush1.bf16.msra.mxu1 %v5537_v30  ;;  %3203 = vmatpush1.bf16.msra.mxu0 %v5585_v31  ;;  %v5624_v31 = vld [vmem:[#allocation7 + $0x260] ss:$8 sps:$4 sm:$0xff]  }
 0x5b5   :  { %3003 = vmatprep.subr.bf16.mxu1 %v5542_v32  ;;  %3204 = vmatprep.subr.bf16.mxu0 %v5590_v33  ;;  %v5629_v32 = vld [vmem:[#allocation7 + $0x254] ss:$8 sps:$4 sm:$0xff]   ;;  %v4868_v33 = vld [vmem:[%s6262_s7 + $0x8] sm:$0xf] }
 0x5b8   :  { %3004 = vmatpush1.bf16.msra.mxu1 %v5540_v34  ;;  %3205 = vmatpush1.bf16.msra.mxu0 %v5588_v37  ;;  %v5627_v34 = vld [vmem:[#allocation7 + $0x250] ss:$8 sps:$4 sm:$0xff]   ;;  %v5632_v37 = vld [vmem:[#allocation7 + $0x244] ss:$8 sps:$4 sm:$0xff]  }
 0x5b9   :  { %3005 = vmatprep.subr.bf16.mxu1 %v5545_v39  ;;  %3206 = vmatprep.subr.bf16.mxu0 %v5593_v41  ;;  %v5635_v39 = vld [vmem:[#allocation7 + $0x234] ss:$8 sps:$4 sm:$0xff]   ;;  %v5633_v41 = vld [vmem:[#allocation7 + $0x230] ss:$8 sps:$4 sm:$0xff]  }
 0x5bc   :  { %3006 = vmatpush1.bf16.msra.mxu1 %v5543_v6  ;;  %3207 = vmatpush1.bf16.msra.mxu0 %v5591_v43  ;;  %v5638_v6 = vld [vmem:[#allocation7 + $0x224] ss:$8 sps:$4 sm:$0xff]   ;;  %v5636_v43 = vld [vmem:[#allocation7 + $0x220] ss:$8 sps:$4 sm:$0xff]  }
 0x5bd   :  { %3007 = vmatprep.subr.bf16.mxu1 %v5548_v44  ;;  %3208 = vmatprep.subr.bf16.mxu0 %v5596_v45  ;;  %v5641_v44 = vld [vmem:[#allocation7 + $0x214] ss:$8 sps:$4 sm:$0xff]   ;;  %v5639_v45 = vld [vmem:[#allocation7 + $0x210] ss:$8 sps:$4 sm:$0xff]  }
 0x5c0   :  { %3008 = vmatpush1.bf16.msra.mxu1 %v5546_v47  ;;  %3209 = vmatpush1.bf16.msra.mxu0 %v5594_v48  ;;  %v5644_v47 = vld [vmem:[#allocation7 + $0x204] ss:$8 sps:$4 sm:$0xff]   ;;  %v5642_v48 = vld [vmem:[#allocation7 + $0x200] ss:$8 sps:$4 sm:$0xff]  }
 0x5c1   :  { %3009 = vmatprep.subr.bf16.mxu1 %v5551_v50  ;;  %3210 = vmatprep.subr.bf16.mxu0 %v5599_v8  ;;  %v5647_v50 = vld [vmem:[#allocation7 + $0x2f4] ss:$8 sps:$4 sm:$0xff]   ;;  %v5645_v8 = vld [vmem:[#allocation7 + $0x2f0] ss:$8 sps:$4 sm:$0xff]  }
 0x5c4   :  { %3010 = vmatpush2.bf16.msra.mxu1 %v5549_v51  ;;  %3211 = vmatpush2.bf16.msra.mxu0 %v5597_v52  ;;  %v5650_v51 = vld [vmem:[#allocation7 + $0x2e4] ss:$8 sps:$4 sm:$0xff]   ;;  %v5648_v52 = vld [vmem:[#allocation7 + $0x2e0] ss:$8 sps:$4 sm:$0xff]  }
 0x5c5   :  { %3011 = vmatprep.subr.bf16.mxu1 %v5554_v53  ;;  %3212 = vmatprep.subr.bf16.mxu0 %v5602_v54  ;;  %v5653_v53 = vld [vmem:[#allocation7 + $0x2d4] ss:$8 sps:$4 sm:$0xff]   ;;  %v5651_v54 = vld [vmem:[#allocation7 + $0x2d0] ss:$8 sps:$4 sm:$0xff]  }
 0x5c8   :  { %3012 = vmatpush2.bf16.msra.mxu1 %v5552_v55  ;;  %3213 = vmatpush2.bf16.msra.mxu0 %v5600_v57  ;;  %v5656_v55 = vld [vmem:[#allocation7 + $0x2c4] ss:$8 sps:$4 sm:$0xff]   ;;  %v5654_v57 = vld [vmem:[#allocation7 + $0x2c0] ss:$8 sps:$4 sm:$0xff]  }
 0x5c9   :  { %3013 = vmatprep.subr.bf16.mxu1 %v5557_v42  ;;  %3214 = vmatprep.subr.bf16.mxu0 %v5605_v58  ;;  %v5659_v42 = vld [vmem:[#allocation7 + $0x2b4] ss:$8 sps:$4 sm:$0xff]   ;;  %v5657_v58 = vld [vmem:[#allocation7 + $0x2b0] ss:$8 sps:$4 sm:$0xff]  }
 0x5cc   :  { %3014 = vmatpush2.bf16.msra.mxu1 %v5555_v59  ;;  %3215 = vmatpush2.bf16.msra.mxu0 %v5603_v10  ;;  %v5662_v59 = vld [vmem:[#allocation7 + $0x2a4] ss:$8 sps:$4 sm:$0xff]   ;;  %v5660_v10 = vld [vmem:[#allocation7 + $0x2a0] ss:$8 sps:$4 sm:$0xff]  }
 0x5cd   :  { %3015 = vmatprep.subr.bf16.mxu1 %v5560_v49  ;;  %3216 = vmatprep.subr.bf16.mxu0 %v5608_v63  ;;  %v5665_v49 = vld [vmem:[#allocation7 + $0x294] ss:$8 sps:$4 sm:$0xff]   ;;  %v5663_v63 = vld [vmem:[#allocation7 + $0x290] ss:$8 sps:$4 sm:$0xff]  }
 0x5d0   :  { %3016 = vmatpush2.bf16.msra.mxu1 %v5558_v1  ;;  %3217 = vmatpush2.bf16.msra.mxu0 %v5606_v60  ;;  %v5668_v1 = vld [vmem:[#allocation7 + $0x284] ss:$8 sps:$4 sm:$0xff]   ;;  %v5666_v60 = vld [vmem:[#allocation7 + $0x280] ss:$8 sps:$4 sm:$0xff]  }
 0x5d1   :  { %3017 = vmatprep.subr.bf16.mxu1 %v5563_v40  ;;  %3218 = vmatprep.subr.bf16.mxu0 %v5611_v56 }
 0x5d4   :  { %3018 = vmatpush2.bf16.msra.mxu1 %v5561_v20  ;;  %3219 = vmatpush2.bf16.msra.mxu0 %v5609_v35 }
 0x5d5   :  { %3019 = vmatprep.subr.bf16.mxu1 %v5566_v61  ;;  %3220 = vmatprep.subr.bf16.mxu0 %v5614_v46 }
 0x5d8   :  { %3020 = vmatpush2.bf16.msra.mxu1 %v5564_v22  ;;  %3221 = vmatpush2.bf16.msra.mxu0 %v5612_v25 }
 0x5d9   :  { %3021 = vmatprep.subr.bf16.mxu1 %v5569_v62  ;;  %3222 = vmatprep.subr.bf16.mxu0 %v5617_v27 }
 0x5dc   :  { %3022 = vmatpush2.bf16.msra.mxu1 %v5567_v4  ;;  %3223 = vmatpush2.bf16.msra.mxu0 %v5615_v3 }
 0x5dd   :  { %3023 = vmatprep.subr.bf16.mxu1 %v5572_v5  ;;  %3224 = vmatprep.subr.bf16.mxu0 %v5620_v9 }
 0x5e0   :  { %3024 = vmatpush2.bf16.msra.mxu1 %v5570_v7  ;;  %3225 = vmatpush2.bf16.msra.mxu0 %v5618_v11 }
 0x5e1   :  { %3254 = vmatprep.subr.bf16.mxu1 %v6176_v26  ;;  %3476 = vmatprep.subr.bf16.mxu0 %v5623_v12  ;;  %v5626_v26 = vld [vmem:[#allocation7 + $0x264] ss:$8 sps:$4 sm:$0xff]   ;;  %v3519_v12 = vld [vmem:[%s6264_s9] sm:$0x3] }
 0x663   :  { %v2711_v0 = vpop.f32.mrf.mxu1  ;;  %v2791_v13 = vpop.f32.mrf.mxu0 }
 0x664   :  { %v2718_v14 = vpack.c.bf16 %v2711_v0, %v2711_v0  ;;  %v2798_v2 = vpack.c.bf16 %v2791_v13, %v2791_v13  ;;  %v3524_v0 = vrot.slane %v3519_v12, %v6076_v36  ;;  %v3537_v36 = vld [vmem:[%s6265_s10] sm:$0x3] }
 0x665   :  { %v2713_v15 = vpop.f32.mrf.mxu1  ;;  %v2793_v17 = vpop.f32.mrf.mxu0 }
 0x666   :  { %v2719_v18 = vpack.c.bf16 %v2713_v15, %v2713_v15  ;;  %v2799_v19 = vpack.c.bf16 %v2793_v17, %v2793_v17  ;;  %v3528_v15 = vrot.slane %v3519_v12, %v6081_v38  ;;  %v4939_v38 = vld [vmem:[%s6265_s10 + $0x4] sm:$0x3] }
 0x667   :  { %v2795_v23 = vpop.f32.mrf.mxu0  ;;  %v2715_v24 = vpop.f32.mrf.mxu1 }
 0x668   :  { %3025 = vmatprep.mubr.bf16.mxu1 %v2799_v19  ;;  %3226 = vmatprep.mubr.bf16.mxu0 %v2719_v18 }
 0x669   :  { %v2796_v29 = vpop.f32.mrf.mxu0  ;;  %3026 = vmatmul.mubr.bf16.vlgmr.msra.gmra.mxu1 %v2798_v2  ;;  %3227 = vmatmul.mubr.bf16.vlgmr.msra.gmra.mxu0 %v2718_v14  ;;  %v2716_v30 = vpop.f32.mrf.mxu1 }
 0x66a   :  { %3255 = vmatpush1.bf16.msra.mxu1 %v6174_v21  ;;  %3272 = vmatprep.mubr.bf16.mxu1 %v5876_v16  ;;  %v5630_v21 = vld [vmem:[#allocation7 + $0x240] ss:$8 sps:$4 sm:$0xff]  }
 0x66b   :  { %3477 = vmatpush1.bf16.msra.mxu0 %v5621_v28 }
 0x66c   :  { %3478 = vmatprep.subr.bf16.mxu0 %v5626_v26 }
 0x66f   :  { %3479 = vmatpush1.bf16.msra.mxu0 %v5624_v31 }
 0x670   :  { %3480 = vmatprep.subr.bf16.mxu0 %v5629_v32  ;;  %v5669_v32 = vld [vmem:[#allocation8 + $0xf8] sm:$0xff]  }
 0x671   :  { %4869 = vmatmul.mubr.msk.bf16.vlgmr.msra.gmra.mxu1 %vm2673_vm2, %v4868_v33  ;;  %v4904_v33 = vld [vmem:[%s6265_s10 + $0x2] sm:$0x3] }
 0x672   :  { %3581 = vmatprep.mubr.bf16.mxu1 %v5876_v16 }
 0x673   :  { %3481 = vmatpush1.bf16.msra.mxu0 %v5627_v34  ;;  %v5670_v34 = vld [vmem:[#allocation8 + $0xb8] sm:$0xff]  }
 0x674   :  { %3482 = vmatprep.subr.bf16.mxu0 %v5632_v37  ;;  %v5671_v37 = vld [vmem:[#allocation8 + $0xf0] sm:$0xff]  }
 0x677   :  { %3483 = vmatpush1.bf16.msra.mxu0 %v5630_v21  ;;  %v5672_v21 = vld [vmem:[#allocation8 + $0xb0] sm:$0xff]  }
 0x678   :  { %3484 = vmatprep.subr.bf16.mxu0 %v5635_v39  ;;  %v5673_v39 = vld [vmem:[#allocation8 + $0xe8] sm:$0xff]  }
 0x67b   :  { %3485 = vmatpush1.bf16.msra.mxu0 %v5633_v41  ;;  %v5674_v41 = vld [vmem:[#allocation8 + $0xa8] sm:$0xff]  }
 0x67c   :  { %3486 = vmatprep.subr.bf16.mxu0 %v5638_v6  ;;  %v5675_v6 = vld [vmem:[#allocation8 + $0xe0] sm:$0xff]  }
 0x67f   :  { %3487 = vmatpush1.bf16.msra.mxu0 %v5636_v43  ;;  %v5676_v43 = vld [vmem:[#allocation8 + $0xa0] sm:$0xff]  }
 0x680   :  { %3488 = vmatprep.subr.bf16.mxu0 %v5641_v44  ;;  %v5678_v44 = vld [vmem:[#allocation8 + $0x98] sm:$0xff]  }
 0x683   :  { %3489 = vmatpush1.bf16.msra.mxu0 %v5639_v45  ;;  %v5679_v45 = vld [vmem:[#allocation8 + $0xd0] sm:$0xff]  }
 0x684   :  { %3490 = vmatprep.subr.bf16.mxu0 %v5644_v47  ;;  %v5680_v47 = vld [vmem:[#allocation8 + $0x90] sm:$0xff]  }
 0x687   :  { %3491 = vmatpush1.bf16.msra.mxu0 %v5642_v48  ;;  %v5681_v48 = vld [vmem:[#allocation8 + $0xc8] sm:$0xff]  }
 0x688   :  { %3492 = vmatprep.subr.bf16.mxu0 %v5647_v50  ;;  %v5682_v50 = vld [vmem:[#allocation8 + $0x88] sm:$0xff]  }
 0x68b   :  { %3493 = vmatpush2.bf16.msra.mxu0 %v5645_v8  ;;  %v5685_v8 = vld [vmem:[#allocation8 + $0x178] sm:$0xff]  }
 0x68c   :  { %3494 = vmatprep.subr.bf16.mxu0 %v5650_v51  ;;  %v5686_v51 = vld [vmem:[#allocation8 + $0x138] sm:$0xff]  }
 0x68f   :  { %3495 = vmatpush2.bf16.msra.mxu0 %v5648_v52  ;;  %v5683_v52 = vld [vmem:[#allocation8 + $0xc0] sm:$0xff]  }
 0x690   :  { %3496 = vmatprep.subr.bf16.mxu0 %v5653_v53  ;;  %v5684_v53 = vld [vmem:[#allocation8 + $0x80] sm:$0xff]  }
 0x693   :  { %3497 = vmatpush2.bf16.msra.mxu0 %v5651_v54  ;;  %v5689_v54 = vld [vmem:[#allocation8 + $0x170] sm:$0xff]  }
 0x694   :  { %3498 = vmatprep.subr.bf16.mxu0 %v5656_v55  ;;  %v5690_v55 = vld [vmem:[#allocation8 + $0x130] sm:$0xff]  }
 0x697   :  { %3499 = vmatpush2.bf16.msra.mxu0 %v5654_v57  ;;  %v5687_v57 = vld [vmem:[#allocation8 + $0x78] sm:$0xff]  }
 0x698   :  { %3500 = vmatprep.subr.bf16.mxu0 %v5659_v42  ;;  %v5693_v42 = vld [vmem:[#allocation8 + $0x168] sm:$0xff]  }
 0x69b   :  { %3501 = vmatpush2.bf16.msra.mxu0 %v5657_v58  ;;  %v5694_v58 = vld [vmem:[#allocation8 + $0x128] sm:$0xff]  }
 0x69c   :  { %3502 = vmatprep.subr.bf16.mxu0 %v5662_v59  ;;  %v5697_v59 = vld [vmem:[#allocation8 + $0x160] sm:$0xff]  }
 0x69f   :  { %3503 = vmatpush2.bf16.msra.mxu0 %v5660_v10  ;;  %v5698_v10 = vld [vmem:[#allocation8 + $0x120] sm:$0xff]  }
 0x6a0   :  { %3504 = vmatprep.subr.bf16.mxu0 %v5665_v49  ;;  %v5701_v49 = vld [vmem:[#allocation8 + $0x158] sm:$0xff]  }
 0x6a3   :  { %3505 = vmatpush2.bf16.msra.mxu0 %v5663_v63  ;;  %v5702_v63 = vld [vmem:[#allocation8 + $0x118] sm:$0xff]  }
 0x6a4   :  { %3506 = vmatprep.subr.bf16.mxu0 %v5668_v1  ;;  %v5705_v1 = vld [vmem:[#allocation8 + $0x150] sm:$0xff]  }
 0x6a7   :  { %3507 = vmatpush2.bf16.msra.mxu0 %v5666_v60  ;;  %v5706_v60 = vld [vmem:[#allocation8 + $0x110] sm:$0xff]  }
 0x729   :  { %v3027_v40 = vpop.f32.mrf.mxu1  ;;  %v3228_v56 = vpop.f32.mrf.mxu0 }
 0x72a   :  { %v3229_v20 = vadd.f32 %v3228_v56, %v3027_v40  ;;  %v5709_v40 = vld [vmem:[#allocation8 + $0x148] sm:$0xff]  }
 0x72b   :  { %v3029_v35 = vpop.f32.mrf.mxu1  ;;  %v3230_v61 = vpop.f32.mrf.mxu0  ;;  %v5710_v56 = vld [vmem:[#allocation8 + $0x108] sm:$0xff]  }
 0x72c   :  { %v3231_v46 = vadd.f32 %v3230_v61, %v3029_v35  ;;  %v5714_v35 = vld [vmem:[#allocation8 + $0x100] sm:$0xff]  }
 0x72d   :  { %v3031_v22 = vpop.f32.mrf.mxu1  ;;  %v3232_v25 = vpop.f32.mrf.mxu0 }
 0x72f   :  { %v3032_v62 = vpop.f32.mrf.mxu1  ;;  %v3233_v27 = vpop.f32.mrf.mxu0 }
 0x731   :  { %v3274_v4 = vpop.f32.mrf.mxu1 }
 0x732   :  { %v3281_v7 = vpack.c.bf16 %v3274_v4, %v3274_v4 }
 0x733   :  { %v3276_v3 = vpop.f32.mrf.mxu1 }
 0x734   :  { %v3282_v5 = vpack.c.bf16 %v3276_v3, %v3276_v3 }
 0x735   :  { %v3278_v9 = vpop.f32.mrf.mxu1 }
 0x736   :  { %3508 = vmatprep.mubr.bf16.mxu0 %v3282_v5 }
 0x737   :  { %v3279_v11 = vpop.f32.mrf.mxu1  ;;  %3509 = vmatmul.mubr.bf16.vlgmr.msra.gmra.mxu0 %v3281_v7 }
 0x738   :  { %4014 = vmatprep.mubr.bf16.mxu0 %v5876_v16 }
 0x7f7   :  { %v3510_v13 = vpop.f32.mrf.mxu0 }
 0x7f8   :  { %v3517_v14 = vadd.f32 %v3510_v13, %v3229_v20  ;;  %v5713_v20 = vld [vmem:[#allocation8 + $0x140] sm:$0xff]  }
 0x7f9   :  { %v3512_v17 = vpop.f32.mrf.mxu0 }
 0x7fa   :  { %v3531_v18 = vadd.f32 %v3524_v0, %v3517_v14  ;;  %v3518_v19 = vadd.f32 %v3512_v17, %v3231_v46  ;;  %v5688_v0 = vld [vmem:[#allocation8 + $0x38] sm:$0xff]  }
 0x7fb   :  { %v3514_v2 = vpop.f32.mrf.mxu0 }
 0x7fc   :  { %v3533_v23 = vmax.f32 %v3531_v18, 0.0  ;;  %v3532_v24 = vadd.f32 %v3528_v15, %v3518_v19  ;;  %v5691_v15 = vld [vmem:[#allocation8 + $0x70] sm:$0xff]   ;;  %v5695_v2 = vld [vmem:[#allocation8 + $0x68] sm:$0xff]  }
 0x7fd   :  { %v3515_v28 = vpop.f32.mrf.mxu0  ;;  %v5692_v19 = vld [vmem:[#allocation8 + $0x30] sm:$0xff]  }
 0x7fe   :  { %v3535_v26 = vpack.c.bf16 %v3533_v23, %v3533_v23  ;;  %v3534_v29 = vmax.f32 %v3532_v24, 0.0  ;;  %v5696_v23 = vld [vmem:[#allocation8 + $0x28] sm:$0xff]   ;;  %v5699_v24 = vld [vmem:[#allocation8 + $0x60] sm:$0xff]  }
 0x7ff   :  { %v5700_v28 = vld [vmem:[#allocation8 + $0x20] sm:$0xff]  }
 0x800   :  { %v3536_v30 = vpack.c.bf16 %v3534_v29, %v3534_v29  ;;  %v3544_v31 = vsel %vm3542_vm3, %v3535_v26, 0  ;;  %v5703_v26 = vld [vmem:[#allocation8 + $0x58] sm:$0xff]  }
 0x801   :  { %v5704_v29 = vld [vmem:[#allocation8 + $0x18] sm:$0xff]  }
 0x802   :  { %4902 = vmatprep.subr.msk.bf16.mxu1 %vm3542_vm3, %v3536_v30  ;;  %4940 = vmatprep.subr.msk.bf16.mxu0 %vm3542_vm3, %v3536_v30 }
 0x803   :  { %3564 = vmatpush1.bf16.msra.mxu1 %v3544_v31  ;;  %3997 = vmatpush1.bf16.msra.mxu0 %v3544_v31 }
 0x804   :  { %4905 = vmatprep.subr.msk.bf16.mxu1 %vm3542_vm3, %v3536_v30  ;;  %5041 = vmatprep.subr.bf16.mxu0 %v5685_v8  ;;  %v5707_v30 = vld [vmem:[#allocation8 + $0x50] sm:$0xff]  }
 0x806   :  { %4903 = vmatmul.mubr.msk.bf16.vlgmr.msra.gmra.mxu1 %vm3538_vm4, %v3537_v36  ;;  %4941 = vmatmul.mubr.msk.bf16.vlgmr.msra.gmra.mxu0 %vm3538_vm4, %v4939_v38  ;;  %v5711_v36 = vld [vmem:[#allocation8 + $0x48] sm:$0xff]  }
 0x807   :  { %3644 = vmatpush1.bf16.msra.mxu1 %v3544_v31  ;;  %3661 = vmatprep.mubr.bf16.mxu1 %v5876_v16  ;;  %v5677_v16 = vld [vmem:[#allocation8 + $0xd8] sm:$0xff]   ;;  %v5708_v31 = vld [vmem:[#allocation8 + $0x10] sm:$0xff]   ;;  %v5712_v38 = vld [vmem:[#allocation8 + $0x8] sm:$0xff]  }
 0x808   :  { %4997 = vmatprep.subr.bf16.mxu1 %v5669_v32  ;;  %5042 = vmatpush3.bf16.msra.mxu0 %v5686_v51  ;;  %v5715_v32 = vld [vmem:[#allocation8 + $0x40] sm:$0xff]  }
 0x809   :  { %5043 = vmatprep.subr.bf16.mxu0 %v5689_v54 }
 0x80c   :  { %5044 = vmatpush3.bf16.msra.mxu0 %v5690_v55 }
 0x80d   :  { %5045 = vmatprep.subr.bf16.mxu0 %v5693_v42 }
 0x80e   :  { %4906 = vmatmul.mubr.msk.bf16.vlgmr.msra.gmra.mxu1 %vm3538_vm4, %v4904_v33  ;;  %v5716_v33 = vld [vmem:[#allocation8] sm:$0xff]  }
 0x80f   :  { %4998 = vmatpush3.bf16.msra.mxu1 %v5670_v34 }
 0x810   :  { %4999 = vmatprep.subr.bf16.mxu1 %v5671_v37  ;;  %5046 = vmatpush3.bf16.msra.mxu0 %v5694_v58  ;;  %v5877_v37 = vmov 0.0  }
 0x811   :  { %5047 = vmatprep.subr.bf16.mxu0 %v5697_v59 }
 0x813   :  { %5000 = vmatpush3.bf16.msra.mxu1 %v5672_v21  ;;  %v5717_v21 = vld [vmem:[#allocation10 + $0x38] sm:$0xff]  }
 0x814   :  { %5001 = vmatprep.subr.bf16.mxu1 %v5673_v39  ;;  %5048 = vmatpush3.bf16.msra.mxu0 %v5698_v10  ;;  %v5718_v39 = vld [vmem:[#allocation10 + $0x30] sm:$0xff]  }
 0x815   :  { %5049 = vmatprep.subr.bf16.mxu0 %v5701_v49 }
 0x817   :  { %5002 = vmatpush3.bf16.msra.mxu1 %v5674_v41  ;;  %v5720_v41 = vld [vmem:[#allocation10 + $0x28] sm:$0xff]  }
 0x818   :  { %5003 = vmatprep.subr.bf16.mxu1 %v5675_v6  ;;  %5050 = vmatpush3.bf16.msra.mxu0 %v5702_v63  ;;  %v5722_v6 = vld [vmem:[#allocation10 + $0x20] sm:$0xff]  }
 0x819   :  { %5051 = vmatprep.subr.bf16.mxu0 %v5705_v1  ;;  %v4958_v63 = vld [vmem:[%s6267_s12] ss:$0 sm:$0xff] }
 0x81b   :  { %5004 = vmatpush3.bf16.msra.mxu1 %v5676_v43  ;;  %v5724_v43 = vld [vmem:[#allocation10 + $0x18] sm:$0xff]  }
 0x81c   :  { %5005 = vmatprep.subr.bf16.mxu1 %v5677_v16  ;;  %5052 = vmatpush3.bf16.msra.mxu0 %v5706_v60  ;;  %v5726_v16 = vld [vmem:[#allocation10 + $0x10] sm:$0xff]  }
 0x81d   :  { %5053 = vmatprep.subr.bf16.mxu0 %v5709_v40 }
 0x81f   :  { %5006 = vmatpush3.bf16.msra.mxu1 %v5678_v44  ;;  %v5728_v44 = vld [vmem:[#allocation10 + $0x8] sm:$0xff]  }
 0x820   :  { %5007 = vmatprep.subr.bf16.mxu1 %v5679_v45  ;;  %5054 = vmatpush3.bf16.msra.mxu0 %v5710_v56 }
 0x821   :  { %5055 = vmatprep.subr.bf16.mxu0 %v5713_v20 }
 0x823   :  { %5008 = vmatpush3.bf16.msra.mxu1 %v5680_v47 }
 0x824   :  { %5009 = vmatprep.subr.bf16.mxu1 %v5681_v48  ;;  %5056 = vmatpush3.bf16.msra.mxu0 %v5714_v35  ;;  %v4205_v35 = vld [vmem:[%s6268_s13] sm:$0x1] }
 0x825   :  { %5153 = vmatprep.subr.bf16.mxu0 %v5877_v37 }
 0x827   :  { %5010 = vmatpush3.bf16.msra.mxu1 %v5682_v50 }
 0x828   :  { %5011 = vmatprep.subr.bf16.mxu1 %v5683_v52 }
 0x82b   :  { %5012 = vmatpush3.bf16.msra.mxu1 %v5684_v53 }
 0x82c   :  { %5019 = vmatprep.subr.bf16.mxu1 %v5687_v57 }
 0x8c6   :  { %v3583_v61 = vpop.f32.mrf.mxu1  ;;  %v4016_v46 = vpop.f32.mrf.mxu0 }
 0x8c7   :  { %v4023_v25 = vpack.c.bf16 %v4016_v46, %v4016_v46  ;;  %v3590_v34 = vpack.c.bf16 %v3583_v61, %v3583_v61  ;;  %v4960_v61 = vld [vmem:[%s6268_s13 + $0x1] sm:$0x1]  ;;  %v5719_v46 = vld [vmem:[#allocation10 + $0x78] sm:$0xff]  }
 0x8c8   :  { %v3585_v22 = vpop.f32.mrf.mxu1  ;;  %v4018_v62 = vpop.f32.mrf.mxu0 }
 0x8c9   :  { %v4024_v27 = vpack.c.bf16 %v4018_v62, %v4018_v62  ;;  %v3591_v17 = vpack.c.bf16 %v3585_v22, %v3585_v22  ;;  %v5721_v22 = vld [vmem:[#allocation10 + $0x70] sm:$0xff]   ;;  %v5725_v62 = vld [vmem:[#allocation10 + $0x60] sm:$0xff]  }
 0x8ca   :  { %v3587_v4 = vpop.f32.mrf.mxu1  ;;  %v4020_v3 = vpop.f32.mrf.mxu0 }
 0x8cb   :  { %4186 = vmatprep.mubr.bf16.mxu0 %v4024_v27  ;;  %v5727_v27 = vld [vmem:[#allocation10 + $0x58] sm:$0xff]   ;;  %v5729_v4 = vld [vmem:[#allocation10 + $0x50] sm:$0xff]   ;;  %v5730_v3 = vld [vmem:[#allocation10] sm:$0xff]  }
 0x8cc   :  { %v3588_v5 = vpop.f32.mrf.mxu1  ;;  %4187 = vmatmul.mubr.bf16.vlgmr.msra.gmra.mxu0 %v4023_v25  ;;  %v4021_v7 = vpop.f32.mrf.mxu0  ;;  %v5723_v25 = vld [vmem:[#allocation10 + $0x68] sm:$0xff]  }
 0x8cd   :  { %5169 = vmatprep.mubr.msk.bf16.mxu0 %vm5878_vm5, %v5877_v37  ;;  %5154 = vmatpush3.bf16.msra.mxu0 %v5717_v21  ;;  %v5731_v5 = vld [vmem:[#allocation10 + $0x48] sm:$0xff]   ;;  %v5732_v7 = vld [vmem:[#allocation10 + $0x40] sm:$0xff]  }
 0x8ce   :  { %v3663_v9 = vpop.f32.mrf.mxu1  ;;  %5155 = vmatprep.subr.bf16.mxu0 %v5877_v37 }
 0x8cf   :  { %v3670_v13 = vpack.c.bf16 %v3663_v9, %v3663_v9 }
 0x8d0   :  { %v3665_v11 = vpop.f32.mrf.mxu1 }
 0x8d1   :  { %v3671_v12 = vpack.c.bf16 %v3665_v11, %v3665_v11  ;;  %5156 = vmatpush3.bf16.msra.mxu0 %v5718_v39 }
 0x8d2   :  { %v3667_v14 = vpop.f32.mrf.mxu1  ;;  %5157 = vmatprep.subr.bf16.mxu0 %v5877_v37 }
 0x8d3   :  { %3833 = vmatprep.mubr.bf16.mxu1 %v3671_v12 }
 0x8d4   :  { %v3668_v18 = vpop.f32.mrf.mxu1  ;;  %3834 = vmatmul.mubr.bf16.vlgmr.msra.gmra.mxu1 %v3670_v13 }
 0x8d5   :  { %5020 = vmatpush3.bf16.msra.mxu1 %v5688_v0  ;;  %3969 = vmatprep.mubr.bf16.mxu1 %v3591_v17 }
 0x8d6   :  { %5021 = vmatprep.subr.bf16.mxu1 %v5691_v15  ;;  %5158 = vmatpush3.bf16.msra.mxu0 %v5720_v41 }
 0x8d7   :  { %5159 = vmatprep.subr.bf16.mxu0 %v5877_v37 }
 0x8d9   :  { %5022 = vmatpush3.bf16.msra.mxu1 %v5692_v19 }
 0x8da   :  { %5023 = vmatprep.subr.bf16.mxu1 %v5695_v2  ;;  %5160 = vmatpush3.bf16.msra.mxu0 %v5722_v6 }
 0x8db   :  { %5161 = vmatprep.subr.bf16.mxu0 %v5877_v37 }
 0x8dd   :  { %5024 = vmatpush3.bf16.msra.mxu1 %v5696_v23 }
 0x8de   :  { %5025 = vmatprep.subr.bf16.mxu1 %v5699_v24  ;;  %5162 = vmatpush3.bf16.msra.mxu0 %v5724_v43 }
 0x8df   :  { %5163 = vmatprep.subr.bf16.mxu0 %v5877_v37 }
 0x8e1   :  { %5026 = vmatpush3.bf16.msra.mxu1 %v5700_v28 }
 0x8e2   :  { %5027 = vmatprep.subr.bf16.mxu1 %v5703_v26  ;;  %5164 = vmatpush3.bf16.msra.mxu0 %v5726_v16 }
 0x8e3   :  { %5165 = vmatprep.subr.bf16.mxu0 %v5877_v37 }
 0x8e5   :  { %5028 = vmatpush3.bf16.msra.mxu1 %v5704_v29  ;;  %v4978_v29 = vld [vmem:[%s6270_s15] ss:$0 sm:$0xff] }
 0x8e6   :  { %5029 = vmatprep.subr.bf16.mxu1 %v5707_v30  ;;  %5166 = vmatpush3.bf16.msra.mxu0 %v5728_v44 }
 0x8e7   :  { %5167 = vmatprep.subr.bf16.mxu0 %v5877_v37 }
 0x8e9   :  { %5030 = vmatpush3.bf16.msra.mxu1 %v5708_v31 }
 0x8ea   :  { %5031 = vmatprep.subr.bf16.mxu1 %v5711_v36  ;;  %5168 = vmatpush3.bf16.msra.mxu0 %v5730_v3 }
 0x8ed   :  { %5032 = vmatpush3.bf16.msra.mxu1 %v5712_v38 }
 0x8ee   :  { %5033 = vmatprep.subr.bf16.mxu1 %v5715_v32 }
 0x8f1   :  { %5034 = vmatpush3.bf16.msra.mxu1 %v5716_v33 }
 0x8f2   :  { %5121 = vmatprep.subr.bf16.mxu1 %v5877_v37 }
 0x8f4   :  { %3970 = vmatmul.mubr.bf16.vlgmr.msra.gmra.mxu1 %v3590_v34 }
 0x8f5   :  { %5123 = vmatprep.mubr.msk.bf16.mxu1 %vm5878_vm5, %v5877_v37 }
 0x98c   :  { %v5057_v45 = vpop.f32.mrf.mxu0 }
 0x98e   :  { %v5058_v47 = vpop.f32.mrf.mxu0 }
 0x98f   :  { %v5059_v59 = vadd.f32 %v5058_v47, %v5057_v45 }
 0x990   :  { %v5060_v48 = vpop.f32.mrf.mxu0 }
 0x992   :  { %v5061_v50 = vpop.f32.mrf.mxu0 }
 0x994   :  { %v5013_v8 = vpop.f32.mrf.mxu1 }
 0x996   :  { %v5014_v51 = vpop.f32.mrf.mxu1 }
 0x997   :  { %v5015_v57 = vadd.f32 %v5014_v51, %v5013_v8 }
 0x998   :  { %v5016_v52 = vpop.f32.mrf.mxu1 }
 0x99a   :  { %v5017_v53 = vpop.f32.mrf.mxu1 }
 0x9b4   :  { %v5035_v54 = vpop.f32.mrf.mxu1 }
 0x9b6   :  { %v5036_v55 = vpop.f32.mrf.mxu1 }
 0x9b7   :  { %v5037_v42 = vadd.f32 %v5036_v55, %v5035_v54 }
 0x9b8   :  { %v5038_v58 = vpop.f32.mrf.mxu1 }
 0x9b9   :  { %v3972_v10 = vadd.f32 %v5037_v42, %v5015_v57 }
 0x9ba   :  { %v5039_v49 = vpop.f32.mrf.mxu1 }
 0x9bb   :  { %v4194_v1 = vadd.f32 %v5059_v59, %v3972_v10 }
 0x9bd   :  { %v4202_v60 = vadd.f32 %v4958_v63, %v4194_v1 }
 0x9bf   :  { %v4203_v40 = vmax.f32 %v4202_v60, 0.0 }
 0x9c1   :  { %v4204_v56 = vpack.c.bf16 %v4203_v40, %v4203_v40 }
 0x9c3   :  { %v4212_v20 = vsel %vm4210_vm6, %v4204_v56, 0 }
 0x9c4   :  { %5122 = vmatpush3.bf16.msra.mxu1 %v4212_v20 }
 0x9c5   :  { %5127 = vmatprep.subr.bf16.mxu1 %v5877_v37 }
 0x9c7   :  { %5124 = vmatmul.mubr.msk.bf16.vlgmr.msra.gmra.mxu1 %vm4206_vm7, %v4205_v35 }
 0x9c8   :  { %5128 = vmatpush3.bf16.msra.mxu1 %v4212_v20  ;;  %5129 = vmatprep.mubr.msk.bf16.mxu1 %vm5878_vm5, %v5877_v37 }
 0x9c9   :  { %5133 = vmatprep.subr.bf16.mxu1 %v5877_v37 }
 0x9cf   :  { %5130 = vmatmul.mubr.msk.bf16.vlgmr.msra.gmra.mxu1 %vm4206_vm7, %v4960_v61 }
 0x9d0   :  { %5134 = vmatpush3.bf16.msra.mxu1 %v5719_v46  ;;  %5149 = vmatprep.mubr.msk.bf16.mxu1 %vm5878_vm5, %v5877_v37 }
 0x9d1   :  { %5135 = vmatprep.subr.bf16.mxu1 %v5877_v37 }
 0x9d4   :  { %5136 = vmatpush3.bf16.msra.mxu1 %v5721_v22 }
 0x9d5   :  { %5137 = vmatprep.subr.bf16.mxu1 %v5877_v37 }
 0x9d8   :  { %5138 = vmatpush3.bf16.msra.mxu1 %v5723_v25 }
 0x9d9   :  { %5139 = vmatprep.subr.bf16.mxu1 %v5877_v37 }
 0x9dc   :  { %5140 = vmatpush3.bf16.msra.mxu1 %v5725_v62 }
 0x9dd   :  { %5141 = vmatprep.subr.bf16.mxu1 %v5877_v37 }
 0x9e0   :  { %5142 = vmatpush3.bf16.msra.mxu1 %v5727_v27 }
 0x9e1   :  { %5143 = vmatprep.subr.bf16.mxu1 %v5877_v37 }
 0x9e4   :  { %5144 = vmatpush3.bf16.msra.mxu1 %v5729_v4 }
 0x9e5   :  { %5145 = vmatprep.subr.bf16.mxu1 %v5877_v37 }
 0x9e8   :  { %5146 = vmatpush3.bf16.msra.mxu1 %v5731_v5 }
 0x9e9   :  { %5147 = vmatprep.subr.bf16.mxu1 %v5877_v37 }
 0x9ec   :  { %5148 = vmatpush3.bf16.msra.mxu1 %v5732_v7 }
 0xa87   :  { %v4248_v9 = vpop.f32.mrf.mxu1 }
 0xa88   :  { %v4254_v11 = vpack.c.bf16 %v4248_v9, %v4248_v9 }
 0xa89   :  { %v5125_v12 = vpop.f32.mrf.mxu1 }
 0xa8a   :  { %5170 = vmatmul.mubr.bf16.vlgmr.msra.gmra.mxu0 %v4254_v11 }
 0xa8b   :  { %v4251_v0 = vpop.f32.mrf.mxu1 }
 0xa8d   :  { %v5126_v13 = vpop.f32.mrf.mxu1 }
 0xa8f   :  { %v4310_v14 = vpop.f32.mrf.mxu1 }
 0xa90   :  { %v4316_v15 = vpack.c.bf16 %v4310_v14, %v4310_v14 }
 0xa91   :  { %v5131_v17 = vpop.f32.mrf.mxu1 }
 0xa92   :  { %5150 = vmatmul.mubr.bf16.vlgmr.msra.gmra.mxu1 %v4316_v15 }
 0xa93   :  { %v4313_v18 = vpop.f32.mrf.mxu1 }
 0xa95   :  { %v5132_v19 = vpop.f32.mrf.mxu1 }
 0xb4a   :  { %v4504_v2 = vpop.f32.mrf.mxu0 }
 0xb4c   :  { %v5171_v23 = vpop.f32.mrf.mxu0 }
 0xb4e   :  { %v4507_v24 = vpop.f32.mrf.mxu0 }
 0xb50   :  { %v5172_v28 = vpop.f32.mrf.mxu0 }
 0xb52   :  { %v4416_v26 = vpop.f32.mrf.mxu1 }
 0xb53   :  { %v4505_v30 = vadd.f32 %v4504_v2, %v4416_v26 }
 0xb54   :  { %v5151_v31 = vpop.f32.mrf.mxu1 }
 0xb55   :  { %v4517_v36 = vadd.f32 %v4978_v29, %v4505_v30 }
 0xb56   :  { %v4419_v38 = vpop.f32.mrf.mxu1 }
 0xb57   :  { %4518 = vst [vmem:[#allocation11] sm:$0x3] %v4517_v36 }
 0xb58   :  { %v5152_v32 = vpop.f32.mrf.mxu1 }
 0xb59   :  { %5848 = shalt.err (!%p5845_p1)
}
 0xb5a   :  { %4528 = dma.vmem_to_hbm [thread:$0]  %s4526_s30, 32, %s6271_s16, [#allocation4]  }
 0xb5b   :  { %5863 = dma.done.wait [#allocation4], 32  }
 0xb5c   :  { %5864 = vsyncadd [#allocation4], 4294967264 }
 0xb5d   :  { %4532 = vsyncpa [#allocation3], 1 }
 0xb5e   :  { %4533 = vsyncpa [#allocation6], 1 }
 0xb5f   :  { %4534 = vsyncpa [#allocation9], 1 }
 0xb60   :  { %4535 = vsyncpa [#allocation4], 1 }

</bundles_post_ra>
